<compile_context>
chip_gen: v7x
topology: tpu7x:2x2x1
jax: 0.10.0
libtpu: 0.0.40
codegen_flags: <defaults>
</compile_context>

<pallas_src>
import functools

import jax
import jax.numpy as jnp
from jax.experimental import pallas as pl
from jax.experimental.pallas import tpu as pltpu

IM_CHANNELS = 1
IM_SIZE = (28, 28)
LATENT_DIM = 64
LAYER_DIMS = [LATENT_DIM, 128, 256, 512, IM_SIZE[0] * IM_SIZE[1] * IM_CHANNELS]

OUT_DIM = LAYER_DIMS[-1]          # 784
OUT_PAD = 896                     # next multiple of 128 -> lane-dense matmul

BN_EPS = 1e-5
LEAKY_SLOPE = 0.01                # nn.LeakyReLU() default negative_slope

# Static per-call cost numbers (CostEstimate / VMEM sizing).
_MATMUL_COLS = (LAYER_DIMS[0] * LAYER_DIMS[1]
                + LAYER_DIMS[1] * LAYER_DIMS[2]
                + LAYER_DIMS[2] * LAYER_DIMS[3]
                + LAYER_DIMS[3] * OUT_PAD)
_WEIGHT_BYTES = 2 * _MATMUL_COLS + 4 * 8 * OUT_PAD          # bf16 weights + f32 vec slab
_ACT_F32_PER_ROW = LATENT_DIM + LAYER_DIMS[1] + LAYER_DIMS[2] + LAYER_DIMS[3] + OUT_PAD


def _linear_bf16(x_f32, w_ref):
    """bf16 x bf16 matmul on the MXU with f32 accumulation (no bias)."""
    return jnp.dot(
        x_f32.astype(jnp.bfloat16),
        w_ref[...],
        preferred_element_type=jnp.float32,
    )


def _bn_leaky(x, gamma, beta):
    """Training-mode BatchNorm1d (biased batch stats) folded to one FMA,
    followed by LeakyReLU(0.01). All math in f32."""
    mean = jnp.mean(x, axis=0, keepdims=True)
    ex2 = jnp.mean(x * x, axis=0, keepdims=True)
    var = jnp.maximum(ex2 - mean * mean, 0.0)          # single-pass variance
    scale = gamma * jax.lax.rsqrt(var + BN_EPS)        # (1, N) work only
    shift = beta - mean * scale
    y = x * scale + shift                              # one FMA on (B, N)
    return jnp.where(y >= 0, y, LEAKY_SLOPE * y)


def generator_kernel(z_ref, w0_ref, w1_ref, w2_hbm, w3_hbm, vec_ref,
                     out_ref, w2_vmem, w3_vmem, dma_sem):
    # vec_ref rows (f32, each padded to OUT_PAD lanes):
    #   0: gamma0  1: beta0  2: gamma1  3: beta1  4: gamma2  5: beta2
    #   6: bias3 (padded)    7: zeros (sublane padding)

    # Kick off the two big weight DMAs immediately so they overlap with the
    # layer-0/1/2 compute instead of serializing in front of the body.
    w2_cp = pltpu.make_async_copy(w2_hbm, w2_vmem, dma_sem.at[0])
    w3_cp = pltpu.make_async_copy(w3_hbm, w3_vmem, dma_sem.at[1])
    w2_cp.start()
    w3_cp.start()

    x = z_ref[...].astype(jnp.float32)

    # Layer 0: Linear(64->128, bias folded into BN) -> BN -> LeakyReLU
    x = _bn_leaky(_linear_bf16(x, w0_ref), vec_ref[0:1, :128], vec_ref[1:2, :128])
    # Layer 1: Linear(128->256) -> BN -> LeakyReLU
    x = _bn_leaky(_linear_bf16(x, w1_ref), vec_ref[2:3, :256], vec_ref[3:4, :256])

    # Layer 2: Linear(256->512) -> BN -> LeakyReLU (wait only when needed)
    w2_cp.wait()
    x = _bn_leaky(_linear_bf16(x, w2_vmem), vec_ref[4:5, :512], vec_ref[5:6, :512])

    # Layer 3: Linear(512->896 padded) + bias -> Tanh
    w3_cp.wait()
    x = jnp.tanh(_linear_bf16(x, w3_vmem) + vec_ref[6:7, :])

    # Store only the real 784 columns (last vreg column is a masked store);
    # this avoids a full (B, 896) f32 HBM round-trip in the wrapper.
    out_ref[...] = x[:, :OUT_DIM].astype(out_ref.dtype)


def init_params(key):
    """Deterministic synthetic parameters matching the PyTorch module's shapes.

    Returns the flat PyTorch-layout list:
      [w0, b0, g0, bt0, w1, b1, g1, bt1, w2, b2, g2, bt2, w3, b3]
    with weights as (in, out) and vectors as (1, out), all f32.
    """
    params = []
    n_layers = len(LAYER_DIMS) - 1
    keys = jax.random.split(key, n_layers)
    for i in range(n_layers):
        d_in, d_out = LAYER_DIMS[i], LAYER_DIMS[i + 1]
        kw, kb = jax.random.split(keys[i])
        bound = 1.0 / jnp.sqrt(d_in)
        w = jax.random.uniform(kw, (d_in, d_out), jnp.float32, -bound, bound)
        b = jax.random.uniform(kb, (1, d_out), jnp.float32, -bound, bound)
        params.append(w)
        params.append(b)
        if i != n_layers - 1:  # BatchNorm affine params (default init: ones/zeros)
            params.append(jnp.ones((1, d_out), jnp.float32))
            params.append(jnp.zeros((1, d_out), jnp.float32))
    return params


def prepare_params(params):
    """One-time conversion of PyTorch-layout f32 params into kernel inputs.

    - weights cast to bf16 (w3 zero-padded to 896 output columns)
    - b0/b1/b2 dropped (exactly cancelled by the following training-mode BN)
    - gamma/beta (x3) and the final bias packed into one (8, 896) f32 slab
    """
    (w0, _b0, g0, bt0,
     w1, _b1, g1, bt1,
     w2, _b2, g2, bt2,
     w3, b3) = params

    w3p = jnp.pad(w3, ((0, 0), (0, OUT_PAD - OUT_DIM)))
    b3p = jnp.pad(b3, ((0, 0), (0, OUT_PAD - OUT_DIM)))

    def _row(v):
        return jnp.pad(v, ((0, 0), (0, OUT_PAD - v.shape[1])))

    vec = jnp.concatenate(
        [_row(g0), _row(bt0), _row(g1), _row(bt1), _row(g2), _row(bt2),
         b3p, jnp.zeros((1, OUT_PAD), jnp.float32)],
        axis=0,
    )  # (8, 896) f32

    return (w0.astype(jnp.bfloat16),
            w1.astype(jnp.bfloat16),
            w2.astype(jnp.bfloat16),
            w3p.astype(jnp.bfloat16),
            vec)


@jax.jit
def generator_forward(z, w0, w1, w2, w3, vec):
    batch_size = z.shape[0]
    z2d = z.reshape(-1, LATENT_DIM)
    b = z2d.shape[0]

    # Scoped-VMEM budget from the actual footprint: weights / scratch buffers
    # + f32 intermediates (~2x slack for compiler temps) + fixed headroom.
    # Clamped at 64 MiB so it is valid on v7x as well as v5e/v6e.
    per_row_bytes = 2 * 4 * _ACT_F32_PER_ROW
    vmem_limit = int(min(_WEIGHT_BYTES + b * per_row_bytes + (16 << 20), 64 << 20))

    cost = pl.CostEstimate(
        flops=2 * b * _MATMUL_COLS,
        transcendentals=b * OUT_PAD,                       # tanh
        bytes_accessed=_WEIGHT_BYTES + 4 * b * (LATENT_DIM + OUT_DIM),
    )

    out_flat = pl.pallas_call(
        generator_kernel,
        out_shape=jax.ShapeDtypeStruct((b, OUT_DIM), jnp.float32),
        in_specs=[
            pl.BlockSpec(memory_space=pltpu.MemorySpace.VMEM),   # z
            pl.BlockSpec(memory_space=pltpu.MemorySpace.VMEM),   # w0 (16 KiB)
            pl.BlockSpec(memory_space=pltpu.MemorySpace.VMEM),   # w1 (64 KiB)
            pl.BlockSpec(memory_space=pl.ANY),                   # w2 (HBM, manual DMA)
            pl.BlockSpec(memory_space=pl.ANY),                   # w3 (HBM, manual DMA)
            pl.BlockSpec(memory_space=pltpu.MemorySpace.VMEM),   # packed gamma/beta/bias
        ],
        out_specs=pl.BlockSpec(memory_space=pltpu.MemorySpace.VMEM),
        scratch_shapes=[
            pltpu.VMEM((LAYER_DIMS[2], LAYER_DIMS[3]), jnp.bfloat16),  # w2 buffer
            pltpu.VMEM((LAYER_DIMS[3], OUT_PAD), jnp.bfloat16),        # w3 buffer
            pltpu.SemaphoreType.DMA((2,)),
        ],
        compiler_params=pltpu.CompilerParams(vmem_limit_bytes=vmem_limit),
        cost_estimate=cost,
    )(z2d, w0, w1, w2, w3, vec)

    # (B, 784) -> (B, 1, 28, 28): contiguous reshape, no slice, no extra copy.
    return out_flat.reshape(batch_size, IM_CHANNELS, IM_SIZE[0], IM_SIZE[1])


def reference_forward(z, params):
    """Pure-JAX f32 reference with full PyTorch semantics (biases included,
    two-pass variance)."""
    (w0, b0, g0, bt0,
     w1, b1, g1, bt1,
     w2, b2, g2, bt2,
     w3, b3) = params
    x = z.reshape(-1, LATENT_DIM)
    for w, b, g, bt in ((w0, b0, g0, bt0), (w1, b1, g1, bt1), (w2, b2, g2, bt2)):
        x = x @ w + b
        mean = jnp.mean(x, axis=0, keepdims=True)
        var = jnp.mean((x - mean) ** 2, axis=0, keepdims=True)
        x = (x - mean) / jnp.sqrt(var + BN_EPS) * g + bt
        x = jnp.where(x >= 0, x, LEAKY_SLOPE * x)
    x = jnp.tanh(x @ w3 + b3)
    return x.reshape(z.shape[0], IM_CHANNELS, IM_SIZE[0], IM_SIZE[1])


if __name__ == "__main__":
    key = jax.random.PRNGKey(0)
    k_z, k_z2, k_p = jax.random.split(key, 3)

    params = init_params(k_p)
    kernel_params = prepare_params(params)   # bf16 weights + packed vectors

    # Small shapes for the correctness check (production operating point is
    # B in the hundreds-to-thousands range; the kernel code path is identical).
    for bsz, kz in ((8, k_z), (64, k_z2)):
        z = jax.random.normal(kz, (bsz, LATENT_DIM), jnp.float32)

        out = generator_forward(z, *kernel_params)
        jax.block_until_ready(out)

        assert out.shape == (bsz, IM_CHANNELS, IM_SIZE[0], IM_SIZE[1])
        assert bool(jnp.all(jnp.isfinite(out)))
        # Tanh output range sanity check.
        assert bool(jnp.max(jnp.abs(out)) <= 1.0 + 1e-6)

        # Numerical check vs f32 reference (tolerance covers bf16 matmul rounding
        # and single-pass-variance rounding).
        ref = reference_forward(z, params)
        max_err = float(jnp.max(jnp.abs(out - ref)))
        assert max_err < 5e-2, f"B={bsz}: max abs err vs f32 reference: {max_err}"

    print("KERNEL_OK")
</pallas_src>

<mosaic_0001>
module attributes {stable_mosaic.version = 11 : i64} {
  func.func @generator_kernel(%arg0: memref<8x64xf32, #tpu.memory_space<vmem>>, %arg1: memref<64x128xbf16, #tpu.memory_space<vmem>>, %arg2: memref<128x256xbf16, #tpu.memory_space<vmem>>, %arg3: memref<256x512xbf16, #tpu.memory_space<any>>, %arg4: memref<512x896xbf16, #tpu.memory_space<any>>, %arg5: memref<8x896xf32, #tpu.memory_space<vmem>>, %arg6: memref<8x784xf32, #tpu.memory_space<vmem>>, %arg7: memref<256x512xbf16, #tpu.memory_space<vmem>>, %arg8: memref<512x896xbf16, #tpu.memory_space<vmem>>, %arg9: memref<2x!tpu.dma_semaphore, #tpu.memory_space<semaphore_mem>>) attributes {dimension_semantics = [], scalar_prefetch = 0 : i64, scratch_operands = 3 : i64, tpu.core_type = #tpu.core_type<tc>} {
    %c0_i32 = arith.constant 0 : i32
    %0 = tpu.memref_slice %arg9[%c0_i32] : memref<2x!tpu.dma_semaphore, #tpu.memory_space<semaphore_mem>> -> memref<1x!tpu.dma_semaphore, #tpu.memory_space<semaphore_mem>>
    %1 = tpu.memref_squeeze %0 : memref<1x!tpu.dma_semaphore, #tpu.memory_space<semaphore_mem>> -> memref<!tpu.dma_semaphore, #tpu.memory_space<semaphore_mem>>
    tpu.enqueue_dma source(%arg3 : memref<256x512xbf16, #tpu.memory_space<any>>) target(%arg7 : memref<256x512xbf16, #tpu.memory_space<vmem>>) target_semaphore(%1 : memref<!tpu.dma_semaphore, #tpu.memory_space<semaphore_mem>>)
    %c1_i32 = arith.constant 1 : i32
    %2 = tpu.memref_slice %arg9[%c1_i32] : memref<2x!tpu.dma_semaphore, #tpu.memory_space<semaphore_mem>> -> memref<1x!tpu.dma_semaphore, #tpu.memory_space<semaphore_mem>>
    %3 = tpu.memref_squeeze %2 : memref<1x!tpu.dma_semaphore, #tpu.memory_space<semaphore_mem>> -> memref<!tpu.dma_semaphore, #tpu.memory_space<semaphore_mem>>
    tpu.enqueue_dma source(%arg4 : memref<512x896xbf16, #tpu.memory_space<any>>) target(%arg8 : memref<512x896xbf16, #tpu.memory_space<vmem>>) target_semaphore(%3 : memref<!tpu.dma_semaphore, #tpu.memory_space<semaphore_mem>>)
    %c0 = arith.constant 0 : index
    %c0_0 = arith.constant 0 : index
    %4 = vector.load %arg0[%c0, %c0_0] : memref<8x64xf32, #tpu.memory_space<vmem>>, vector<8x64xf32>
    %5 = arith.truncf %4 : vector<8x64xf32> to vector<8x64xbf16>
    %c0_1 = arith.constant 0 : index
    %c0_2 = arith.constant 0 : index
    %6 = vector.load %arg1[%c0_1, %c0_2] : memref<64x128xbf16, #tpu.memory_space<vmem>>, vector<64x128xbf16>
    %cst = arith.constant dense<0.000000e+00> : vector<8x128xf32>
    %7 = tpu.matmul %5, %6, %cst {dimension_numbers = #tpu.dot_dimension_numbers<[1], [0], [0], [1], [0, 0, 1, 1], [], []>} : vector<8x64xbf16>, vector<64x128xbf16>, vector<8x128xf32> -> vector<8x128xf32>
    %c0_3 = arith.constant 0 : index
    %c0_4 = arith.constant 0 : index
    %8 = vector.load %arg5[%c0_3, %c0_4] : memref<8x896xf32, #tpu.memory_space<vmem>>, vector<1x128xf32>
    %c1 = arith.constant 1 : index
    %c0_5 = arith.constant 0 : index
    %9 = vector.load %arg5[%c1, %c0_5] : memref<8x896xf32, #tpu.memory_space<vmem>>, vector<1x128xf32>
    %cst_6 = arith.constant dense<0.000000e+00> : vector<128xf32>
    %10 = vector.multi_reduction <add>, %7, %cst_6 [0] : vector<8x128xf32> to vector<128xf32>
    %11 = vector.shape_cast %10 : vector<128xf32> to vector<1x128xf32>
    %cst_7 = arith.constant 8.000000e+00 : f32
    %12 = vector.broadcast %cst_7 : f32 to vector<1x128xf32>
    %13 = arith.divf %11, %12 : vector<1x128xf32>
    %14 = arith.mulf %7, %7 : vector<8x128xf32>
    %cst_8 = arith.constant dense<0.000000e+00> : vector<128xf32>
    %15 = vector.multi_reduction <add>, %14, %cst_8 [0] : vector<8x128xf32> to vector<128xf32>
    %16 = vector.shape_cast %15 : vector<128xf32> to vector<1x128xf32>
    %cst_9 = arith.constant 8.000000e+00 : f32
    %17 = vector.broadcast %cst_9 : f32 to vector<1x128xf32>
    %18 = arith.divf %16, %17 : vector<1x128xf32>
    %19 = arith.mulf %13, %13 : vector<1x128xf32>
    %20 = arith.subf %18, %19 : vector<1x128xf32>
    %cst_10 = arith.constant 0.000000e+00 : f32
    %21 = vector.broadcast %cst_10 : f32 to vector<1x128xf32>
    %22 = arith.maximumf %20, %21 : vector<1x128xf32>
    %cst_11 = arith.constant 9.99999974E-6 : f32
    %23 = vector.broadcast %cst_11 : f32 to vector<1x128xf32>
    %24 = arith.addf %22, %23 : vector<1x128xf32>
    %25 = math.rsqrt %24 : vector<1x128xf32>
    %26 = arith.mulf %8, %25 : vector<1x128xf32>
    %27 = arith.mulf %13, %26 : vector<1x128xf32>
    %28 = arith.subf %9, %27 : vector<1x128xf32>
    %29 = vector.broadcast %26 : vector<1x128xf32> to vector<8x128xf32>
    %30 = arith.mulf %7, %29 : vector<8x128xf32>
    %31 = vector.broadcast %28 : vector<1x128xf32> to vector<8x128xf32>
    %32 = arith.addf %30, %31 : vector<8x128xf32>
    %cst_12 = arith.constant 0.000000e+00 : f32
    %33 = vector.broadcast %cst_12 : f32 to vector<8x128xf32>
    %34 = arith.cmpf oge, %32, %33 : vector<8x128xf32>
    %cst_13 = arith.constant 0.00999999977 : f32
    %35 = vector.broadcast %cst_13 : f32 to vector<8x128xf32>
    %36 = arith.mulf %35, %32 : vector<8x128xf32>
    %37 = arith.select %34, %32, %36 : vector<8x128xi1>, vector<8x128xf32>
    %38 = arith.truncf %37 : vector<8x128xf32> to vector<8x128xbf16>
    %c0_14 = arith.constant 0 : index
    %c0_15 = arith.constant 0 : index
    %39 = vector.load %arg2[%c0_14, %c0_15] : memref<128x256xbf16, #tpu.memory_space<vmem>>, vector<128x256xbf16>
    %cst_16 = arith.constant dense<0.000000e+00> : vector<8x256xf32>
    %40 = tpu.matmul %38, %39, %cst_16 {dimension_numbers = #tpu.dot_dimension_numbers<[1], [0], [0], [1], [0, 0, 1, 1], [], []>} : vector<8x128xbf16>, vector<128x256xbf16>, vector<8x256xf32> -> vector<8x256xf32>
    %c2 = arith.constant 2 : index
    %c0_17 = arith.constant 0 : index
    %41 = vector.load %arg5[%c2, %c0_17] : memref<8x896xf32, #tpu.memory_space<vmem>>, vector<1x256xf32>
    %c3 = arith.constant 3 : index
    %c0_18 = arith.constant 0 : index
    %42 = vector.load %arg5[%c3, %c0_18] : memref<8x896xf32, #tpu.memory_space<vmem>>, vector<1x256xf32>
    %cst_19 = arith.constant dense<0.000000e+00> : vector<256xf32>
    %43 = vector.multi_reduction <add>, %40, %cst_19 [0] : vector<8x256xf32> to vector<256xf32>
    %44 = vector.shape_cast %43 : vector<256xf32> to vector<1x256xf32>
    %cst_20 = arith.constant 8.000000e+00 : f32
    %45 = vector.broadcast %cst_20 : f32 to vector<1x256xf32>
    %46 = arith.divf %44, %45 : vector<1x256xf32>
    %47 = arith.mulf %40, %40 : vector<8x256xf32>
    %cst_21 = arith.constant dense<0.000000e+00> : vector<256xf32>
    %48 = vector.multi_reduction <add>, %47, %cst_21 [0] : vector<8x256xf32> to vector<256xf32>
    %49 = vector.shape_cast %48 : vector<256xf32> to vector<1x256xf32>
    %cst_22 = arith.constant 8.000000e+00 : f32
    %50 = vector.broadcast %cst_22 : f32 to vector<1x256xf32>
    %51 = arith.divf %49, %50 : vector<1x256xf32>
    %52 = arith.mulf %46, %46 : vector<1x256xf32>
    %53 = arith.subf %51, %52 : vector<1x256xf32>
    %cst_23 = arith.constant 0.000000e+00 : f32
    %54 = vector.broadcast %cst_23 : f32 to vector<1x256xf32>
    %55 = arith.maximumf %53, %54 : vector<1x256xf32>
    %cst_24 = arith.constant 9.99999974E-6 : f32
    %56 = vector.broadcast %cst_24 : f32 to vector<1x256xf32>
    %57 = arith.addf %55, %56 : vector<1x256xf32>
    %58 = math.rsqrt %57 : vector<1x256xf32>
    %59 = arith.mulf %41, %58 : vector<1x256xf32>
    %60 = arith.mulf %46, %59 : vector<1x256xf32>
    %61 = arith.subf %42, %60 : vector<1x256xf32>
    %62 = vector.broadcast %59 : vector<1x256xf32> to vector<8x256xf32>
    %63 = arith.mulf %40, %62 : vector<8x256xf32>
    %64 = vector.broadcast %61 : vector<1x256xf32> to vector<8x256xf32>
    %65 = arith.addf %63, %64 : vector<8x256xf32>
    %cst_25 = arith.constant 0.000000e+00 : f32
    %66 = vector.broadcast %cst_25 : f32 to vector<8x256xf32>
    %67 = arith.cmpf oge, %65, %66 : vector<8x256xf32>
    %cst_26 = arith.constant 0.00999999977 : f32
    %68 = vector.broadcast %cst_26 : f32 to vector<8x256xf32>
    %69 = arith.mulf %68, %65 : vector<8x256xf32>
    %70 = arith.select %67, %65, %69 : vector<8x256xi1>, vector<8x256xf32>
    %c0_i32_27 = arith.constant 0 : i32
    %71 = tpu.memref_slice %arg9[%c0_i32_27] : memref<2x!tpu.dma_semaphore, #tpu.memory_space<semaphore_mem>> -> memref<1x!tpu.dma_semaphore, #tpu.memory_space<semaphore_mem>>
    %72 = tpu.memref_squeeze %71 : memref<1x!tpu.dma_semaphore, #tpu.memory_space<semaphore_mem>> -> memref<!tpu.dma_semaphore, #tpu.memory_space<semaphore_mem>>
    tpu.wait_dma2 semaphore(%72 : memref<!tpu.dma_semaphore, #tpu.memory_space<semaphore_mem>>) src(%arg3 : memref<256x512xbf16, #tpu.memory_space<any>>) dst(%arg7 : memref<256x512xbf16, #tpu.memory_space<vmem>>)
    %73 = arith.truncf %70 : vector<8x256xf32> to vector<8x256xbf16>
    %c0_28 = arith.constant 0 : index
    %c0_29 = arith.constant 0 : index
    %74 = vector.load %arg7[%c0_28, %c0_29] : memref<256x512xbf16, #tpu.memory_space<vmem>>, vector<256x512xbf16>
    %cst_30 = arith.constant dense<0.000000e+00> : vector<8x512xf32>
    %75 = tpu.matmul %73, %74, %cst_30 {dimension_numbers = #tpu.dot_dimension_numbers<[1], [0], [0], [1], [0, 0, 1, 1], [], []>} : vector<8x256xbf16>, vector<256x512xbf16>, vector<8x512xf32> -> vector<8x512xf32>
    %c4 = arith.constant 4 : index
    %c0_31 = arith.constant 0 : index
    %76 = vector.load %arg5[%c4, %c0_31] : memref<8x896xf32, #tpu.memory_space<vmem>>, vector<1x512xf32>
    %c5 = arith.constant 5 : index
    %c0_32 = arith.constant 0 : index
    %77 = vector.load %arg5[%c5, %c0_32] : memref<8x896xf32, #tpu.memory_space<vmem>>, vector<1x512xf32>
    %cst_33 = arith.constant dense<0.000000e+00> : vector<512xf32>
    %78 = vector.multi_reduction <add>, %75, %cst_33 [0] : vector<8x512xf32> to vector<512xf32>
    %79 = vector.shape_cast %78 : vector<512xf32> to vector<1x512xf32>
    %cst_34 = arith.constant 8.000000e+00 : f32
    %80 = vector.broadcast %cst_34 : f32 to vector<1x512xf32>
    %81 = arith.divf %79, %80 : vector<1x512xf32>
    %82 = arith.mulf %75, %75 : vector<8x512xf32>
    %cst_35 = arith.constant dense<0.000000e+00> : vector<512xf32>
    %83 = vector.multi_reduction <add>, %82, %cst_35 [0] : vector<8x512xf32> to vector<512xf32>
    %84 = vector.shape_cast %83 : vector<512xf32> to vector<1x512xf32>
    %cst_36 = arith.constant 8.000000e+00 : f32
    %85 = vector.broadcast %cst_36 : f32 to vector<1x512xf32>
    %86 = arith.divf %84, %85 : vector<1x512xf32>
    %87 = arith.mulf %81, %81 : vector<1x512xf32>
    %88 = arith.subf %86, %87 : vector<1x512xf32>
    %cst_37 = arith.constant 0.000000e+00 : f32
    %89 = vector.broadcast %cst_37 : f32 to vector<1x512xf32>
    %90 = arith.maximumf %88, %89 : vector<1x512xf32>
    %cst_38 = arith.constant 9.99999974E-6 : f32
    %91 = vector.broadcast %cst_38 : f32 to vector<1x512xf32>
    %92 = arith.addf %90, %91 : vector<1x512xf32>
    %93 = math.rsqrt %92 : vector<1x512xf32>
    %94 = arith.mulf %76, %93 : vector<1x512xf32>
    %95 = arith.mulf %81, %94 : vector<1x512xf32>
    %96 = arith.subf %77, %95 : vector<1x512xf32>
    %97 = vector.broadcast %94 : vector<1x512xf32> to vector<8x512xf32>
    %98 = arith.mulf %75, %97 : vector<8x512xf32>
    %99 = vector.broadcast %96 : vector<1x512xf32> to vector<8x512xf32>
    %100 = arith.addf %98, %99 : vector<8x512xf32>
    %cst_39 = arith.constant 0.000000e+00 : f32
    %101 = vector.broadcast %cst_39 : f32 to vector<8x512xf32>
    %102 = arith.cmpf oge, %100, %101 : vector<8x512xf32>
    %cst_40 = arith.constant 0.00999999977 : f32
    %103 = vector.broadcast %cst_40 : f32 to vector<8x512xf32>
    %104 = arith.mulf %103, %100 : vector<8x512xf32>
    %105 = arith.select %102, %100, %104 : vector<8x512xi1>, vector<8x512xf32>
    %c1_i32_41 = arith.constant 1 : i32
    %106 = tpu.memref_slice %arg9[%c1_i32_41] : memref<2x!tpu.dma_semaphore, #tpu.memory_space<semaphore_mem>> -> memref<1x!tpu.dma_semaphore, #tpu.memory_space<semaphore_mem>>
    %107 = tpu.memref_squeeze %106 : memref<1x!tpu.dma_semaphore, #tpu.memory_space<semaphore_mem>> -> memref<!tpu.dma_semaphore, #tpu.memory_space<semaphore_mem>>
    tpu.wait_dma2 semaphore(%107 : memref<!tpu.dma_semaphore, #tpu.memory_space<semaphore_mem>>) src(%arg4 : memref<512x896xbf16, #tpu.memory_space<any>>) dst(%arg8 : memref<512x896xbf16, #tpu.memory_space<vmem>>)
    %108 = arith.truncf %105 : vector<8x512xf32> to vector<8x512xbf16>
    %c0_42 = arith.constant 0 : index
    %c0_43 = arith.constant 0 : index
    %109 = vector.load %arg8[%c0_42, %c0_43] : memref<512x896xbf16, #tpu.memory_space<vmem>>, vector<512x896xbf16>
    %cst_44 = arith.constant dense<0.000000e+00> : vector<8x896xf32>
    %110 = tpu.matmul %108, %109, %cst_44 {dimension_numbers = #tpu.dot_dimension_numbers<[1], [0], [0], [1], [0, 0, 1, 1], [], []>} : vector<8x512xbf16>, vector<512x896xbf16>, vector<8x896xf32> -> vector<8x896xf32>
    %c6 = arith.constant 6 : index
    %c0_45 = arith.constant 0 : index
    %111 = vector.load %arg5[%c6, %c0_45] : memref<8x896xf32, #tpu.memory_space<vmem>>, vector<1x896xf32>
    %112 = vector.broadcast %111 : vector<1x896xf32> to vector<8x896xf32>
    %113 = arith.addf %110, %112 : vector<8x896xf32>
    %114 = math.tanh %113 : vector<8x896xf32>
    %115 = vector.extract_strided_slice %114 {offsets = [0, 0], sizes = [8, 784], strides = [1, 1]} : vector<8x896xf32> to vector<8x784xf32>
    %c0_46 = arith.constant 0 : index
    %c0_47 = arith.constant 0 : index
    %116 = vector.load %arg6[%c0_46, %c0_47] : memref<8x784xf32, #tpu.memory_space<vmem>>, vector<8x784xf32>
    tpu.vector_store %arg6[%c0_46, %c0_47], %115 {strides = array<i32>} : memref<8x784xf32, #tpu.memory_space<vmem>>, vector<8x784xf32>,
    return
  }
}

</mosaic_0001>

<bundles_post_ra>
// kernel: generator_forward.1
= control target key start
LH: loop header
LB: loop body
LE: loop exit
PB: predicated region body
PF: predicated region fallthrough
CT: control target
= control target key end

     0   :  { %11 = vsyncpa [#allocation6], 0  ;;  %s2052_s0 = inlined_call_operand.hbm [shape: f32[8,64], index: 0, kind: input, shape index: {}]   ;;  %s2053_s1 = inlined_call_operand.hbm [shape: bf16[64,128], index: 1, kind: input, shape index: {}]   ;;  %s2054_s2 = inlined_call_operand.hbm [shape: bf16[128,256], index: 2, kind: input, shape index: {}]   ;;  %s2055_s3 = inlined_call_operand.hbm [shape: bf16[256,512], index: 3, kind: input, shape index: {}]   ;;  %s2056_s4 = inlined_call_operand.hbm [shape: bf16[512,896], index: 4, kind: input, shape index: {}]   ;;  %s2057_s5 = inlined_call_operand.hbm [shape: f32[8,896], index: 5, kind: input, shape index: {}]   ;;  %s2058_s6 = inlined_call_operand.vmem [shape: f32[8,784], index: 6, kind: output, shape index: {}]  }
   0x1   :  { %12 = vsyncpa [#allocation8], 0 }
   0x2   :  { %13 = vsyncpa [#allocation11], 0  ;;  %s1783_s21 = smov [#allocation7]   ;;  %s1685_s25 = scalar_lea.hbm %s2053_s1, 512 }
   0x3   :  { %s29_s22 = sshll.u32 %s1783_s21, 4  ;;  %p1686_p0 = scmp.ne.s32.totalorder %s2053_s1, %s1685_s25  ;;  %s30_s22 = int_to_ptr.vmem [resolvable:$true] %s29_s22 }
   0x4   :  { %p1689_p1 = scmp.lt.u32.totalorder %s1685_s25, %s2053_s1 }
   0x6   :  { %p1691_p2 = pnand %p1689_p1, %p1686_p0 }
   0x8   :  { %1694 = shalt.err (!%p1691_p2)
}
   0x9   :  { %s1695_s30 = scalar_lea.vmem %s30_s22, 512  ;;  %p1700_p4 = scmp.lt.s32.totalorder %s30_s22, %s30_s22 }
   0xa   :  { %p1696_p3 = scmp.ne.s32.totalorder %s30_s22, %s1695_s30  ;;  %p1701_p5 = scmp.lt.s32.totalorder %s1695_s30, %s1695_s30 }
   0xc   :  { %p1702_p6 = por %p1701_p5, %p1700_p4 }
   0xe   :  { %p1703_p7 = pnand %p1702_p6, %p1696_p3 }
  0x10   :  { %1706 = shalt.err (!%p1703_p7)
}
  0x11   :  { %s1784_s7 = smov 64   ;;  %s1785_s8 = smov 4  }
  0x12   :  { %35 = dma.hbm_to_vmem [thread:$0]  %s2053_s1, 512, %s30_s22, [#allocation8], %s1784_s7, %s1784_s7, %s1785_s8  }
  0x13   :  { %s1786_s11 = smov [#allocation5]   ;;  %s1787_s13 = smov [#allocation9]  }
  0x14   :  { %s20_s12 = sshll.u32 %s1786_s11, 4  ;;  %s41_s14 = sshll.u32 %s1787_s13, 4  ;;  %s21_s12 = int_to_ptr.vmem [resolvable:$true] %s20_s12  ;;  %s42_s14 = int_to_ptr.vmem [resolvable:$true] %s41_s14 }
  0x15   :  { %s1707_s17 = scalar_lea.hbm %s2052_s0, 128 }
  0x16   :  { %p1708_p8 = scmp.ne.s32.totalorder %s2052_s0, %s1707_s17  ;;  %p1711_p9 = scmp.lt.u32.totalorder %s1707_s17, %s2052_s0 }
  0x18   :  { %p1713_p10 = pnand %p1711_p9, %p1708_p8 }
  0x1a   :  { %1716 = shalt.err (!%p1713_p10)
}
  0x1b   :  { %s1717_s1 = scalar_lea.vmem %s21_s12, 128  ;;  %p1722_p12 = scmp.lt.s32.totalorder %s21_s12, %s21_s12 }
  0x1c   :  { %p1718_p11 = scmp.ne.s32.totalorder %s21_s12, %s1717_s1  ;;  %p1723_p13 = scmp.lt.s32.totalorder %s1717_s1, %s1717_s1 }
  0x1e   :  { %p1724_p0 = por %p1723_p13, %p1722_p12 }
  0x20   :  { %p1725_p1 = pnand %p1724_p0, %p1718_p11 }
  0x22   :  { %1728 = shalt.err (!%p1725_p1)
}
  0x23   :  { %23 = dma.hbm_to_vmem [thread:$0]  %s2052_s0, 128, %s21_s12, [#allocation6]  }
  0x24   :  { %s1729_s26 = scalar_lea.hbm %s2054_s2, 2048 }
  0x25   :  { %p1730_p2 = scmp.ne.s32.totalorder %s2054_s2, %s1729_s26  ;;  %p1733_p3 = scmp.lt.u32.totalorder %s1729_s26, %s2054_s2 }
  0x27   :  { %p1735_p4 = pnand %p1733_p3, %p1730_p2 }
  0x29   :  { %1738 = shalt.err (!%p1735_p4)
}
  0x2a   :  { %s1739_s9 = scalar_lea.vmem %s42_s14, 2048  ;;  %p1744_p6 = scmp.lt.s32.totalorder %s42_s14, %s42_s14 }
  0x2b   :  { %p1740_p5 = scmp.ne.s32.totalorder %s42_s14, %s1739_s9  ;;  %p1745_p7 = scmp.lt.s32.totalorder %s1739_s9, %s1739_s9 }
  0x2d   :  { %p1746_p8 = por %p1745_p7, %p1744_p6 }
  0x2f   :  { %p1747_p9 = pnand %p1746_p8, %p1740_p5 }
  0x31   :  { %1750 = shalt.err (!%p1747_p9)
}
  0x32   :  { %s1788_s0 = smov 128   ;;  %s1789_s10 = smov 8  }
  0x33   :  { %47 = dma.hbm_to_vmem [thread:$0]  %s2054_s2, 2048, %s42_s14, [#allocation8], %s1788_s0, %s1788_s0, %s1789_s10  }
  0x34   :  { %s1790_s13 = smov [#allocation10]   ;;  %s1751_s18 = scalar_lea.hbm %s2057_s5, 896 }
  0x35   :  { %s54_s15 = sshll.u32 %s1790_s13, 4  ;;  %p1752_p10 = scmp.ne.s32.totalorder %s2057_s5, %s1751_s18  ;;  %s55_s15 = int_to_ptr.vmem [resolvable:$true] %s54_s15 }
  0x36   :  { %p1755_p11 = scmp.lt.u32.totalorder %s1751_s18, %s2057_s5 }
  0x38   :  { %p1757_p12 = pnand %p1755_p11, %p1752_p10 }
  0x3a   :  { %1760 = shalt.err (!%p1757_p12)
}
  0x3b   :  { %s1761_s22 = scalar_lea.vmem %s55_s15, 896  ;;  %p1766_p0 = scmp.lt.s32.totalorder %s55_s15, %s55_s15 }
  0x3c   :  { %p1762_p13 = scmp.ne.s32.totalorder %s55_s15, %s1761_s22  ;;  %p1767_p1 = scmp.lt.s32.totalorder %s1761_s22, %s1761_s22 }
  0x3e   :  { %p1768_p2 = por %p1767_p1, %p1766_p0 }
  0x40   :  { %p1769_p3 = pnand %p1768_p2, %p1762_p13 }
  0x42   :  { %1772 = shalt.err (!%p1769_p3)
}
  0x43   :  { %57 = dma.hbm_to_vmem [thread:$0]  %s2057_s5, 896, %s55_s15, [#allocation11]  }
  0x44   :  { %1773 = dma.done.wait [#allocation6], 128  }
  0x45   :  { %1774 = vsyncadd [#allocation6], 4294967168 }
  0x46   :  { %1775 = dma.done.wait [#allocation8], 2560  }
  0x47   :  { %1776 = vsyncadd [#allocation8], 4294964736 }
  0x48   :  { %1777 = dma.done.wait [#allocation11], 896  }
  0x49   :  { %1778 = vsyncadd [#allocation11], 4294966400  ;;  %s75_s23 = sld [smem:[#allocation0]]   ;;  %s1791_s24 = smov 512   ;;  %v1792_v0 = vmov 0.0   ;;  %vm1793_vm0 = vmmov 0  }
  0x4a   :  { %87 = sst [smem:[#allocation13]] %s1791_s24  ;;  %1575 = vmatprep.subr.bf16.mxu1 %v1792_v0  ;;  %1583 = vmatprep.mubr.msk.bf16.mxu1 %vm1793_vm0, %v1792_v0  ;;  %s1794_s25 = smov [#allocation2]   ;;  %vm175_vm1 = vcmask 523264   ;;  %v1805_v23 = vmov 0  }
  0x4b   :  { %89 = sst [smem:[#allocation13 + $0x1]] %s1791_s24  ;;  %s83_s26 = sshll.u32 %s1794_s25, 4  ;;  %s84_s26 = int_to_ptr.vmem [resolvable:$true] %s83_s26 }
  0x4c   :  { %91 = sst [smem:[#allocation13 + $0x2]] %s1785_s8  ;;  %s1795_s5 = smov 256  }
  0x4d   :  { %93 = sst [smem:[#allocation13 + $0x3]] %s1784_s7  ;;  %s1796_s29 = smov 2  }
  0x4e   :  { %95 = sst [smem:[#allocation13 + $0x4]] %s1788_s0  ;;  %s1797_s30 = smov [#allocation4]  }
  0x4f   :  { %99 = sst [smem:[#allocation13 + $0x6]] %s1795_s5  ;;  %s1499_s27 = sshll.u32 %s75_s23, 26 }
  0x50   :  { %101 = sst [smem:[#allocation13 + $0x7]] %s1784_s7  ;;  %s1500_s28 = sadd.s32 134217728, %s1499_s27 }
  0x51   :  { %103 = sst [smem:[#allocation13 + $0x8]] %s1785_s8  ;;  %s1798_s9 = smov [#allocation12]  }
  0x52   :  { %97 = sst [smem:[#allocation13 + $0x5]] %s1796_s29  ;;  %s1799_s12 = smov 896  }
  0x53   :  { %105 = dma.general %s2055_s3, 8192, %s84_s26, %s1797_s30, %s1798_s9, [#allocation13], %s1500_s28, 0  }
  0x54   :  { %122 = sst [smem:[#allocation15]] %s1799_s12  ;;  %s1800_s13 = smov 7  }
  0x55   :  { %124 = sst [smem:[#allocation15 + $0x1]] %s1799_s12  ;;  %s1801_s15 = smov [#allocation3]  }
  0x56   :  { %126 = sst [smem:[#allocation15 + $0x2]] %s1800_s13  ;;  %s118_s16 = sshll.u32 %s1801_s15, 4  ;;  %s119_s16 = int_to_ptr.vmem [resolvable:$true] %s118_s16 }
  0x57   :  { %128 = sst [smem:[#allocation15 + $0x3]] %s1784_s7  ;;  %s1802_s17 = smov 448  }
  0x58   :  { %130 = sst [smem:[#allocation15 + $0x4]] %s1788_s0  ;;  %s1803_s3 = smov [#allocation4 + $0x1]  }
  0x59   :  { %132 = sst [smem:[#allocation15 + $0x5]] %s1796_s29  ;;  %s1804_s18 = smov [#allocation14]  }
  0x5a   :  { %134 = sst [smem:[#allocation15 + $0x6]] %s1802_s17 }
  0x5b   :  { %136 = sst [smem:[#allocation15 + $0x7]] %s1784_s7 }
  0x5c   :  { %138 = sst [smem:[#allocation15 + $0x8]] %s1785_s8 }
  0x5d   :  { %140 = dma.general %s2056_s4, 28672, %s119_s16, %s1803_s3, %s1804_s18, [#allocation15], %s1500_s28, 0  }
  0x5e   :  { %v1629_v1 = vld [vmem:[#allocation7] sm:$0xff]   ;;  %v1630_v2 = vld [vmem:[#allocation7 + $0x8] sm:$0xff]   ;;  %v1631_v3 = vld [vmem:[#allocation7 + $0x10] sm:$0xff]  }
  0x5f   :  { %1576 = vmatpush3.bf16.msra.mxu1 %v1629_v1  ;;  %v1632_v4 = vld [vmem:[#allocation7 + $0x18] sm:$0xff]   ;;  %v1635_v7 = vld [vmem:[#allocation9 + $0x4] ss:$8 sps:$4 sm:$0xff]   ;;  %v1633_v8 = vld [vmem:[#allocation9] ss:$8 sps:$4 sm:$0xff]  }
  0x60   :  { %1577 = vmatprep.subr.bf16.mxu1 %v1792_v0  ;;  %v141_v5 = vld [vmem:[#allocation5] sm:$0xff]  ;;  %v1641_v11 = vld [vmem:[#allocation9 + $0x24] ss:$8 sps:$4 sm:$0xff]   ;;  %v1639_v12 = vld [vmem:[#allocation9 + $0x20] ss:$8 sps:$4 sm:$0xff]  }
  0x61   :  { %v142_v6 = vpack.c.bf16 %v141_v5, %v141_v5  ;;  %v1638_v9 = vld [vmem:[#allocation9 + $0x14] ss:$8 sps:$4 sm:$0xff]   ;;  %v1636_v10 = vld [vmem:[#allocation9 + $0x10] ss:$8 sps:$4 sm:$0xff]   ;;  %v1647_v15 = vld [vmem:[#allocation9 + $0x44] ss:$8 sps:$4 sm:$0xff]  }
  0x62   :  { %v1644_v13 = vld [vmem:[#allocation9 + $0x34] ss:$8 sps:$4 sm:$0xff]   ;;  %v1642_v14 = vld [vmem:[#allocation9 + $0x30] ss:$8 sps:$4 sm:$0xff]   ;;  %v1645_v16 = vld [vmem:[#allocation9 + $0x40] ss:$8 sps:$4 sm:$0xff]  }
  0x63   :  { %1578 = vmatpush3.bf16.msra.mxu1 %v1630_v2  ;;  %v1650_v17 = vld [vmem:[#allocation9 + $0x54] ss:$8 sps:$4 sm:$0xff]   ;;  %v1648_v18 = vld [vmem:[#allocation9 + $0x50] ss:$8 sps:$4 sm:$0xff]   ;;  %v1653_v19 = vld [vmem:[#allocation9 + $0x64] ss:$8 sps:$4 sm:$0xff]  }
  0x64   :  { %1579 = vmatprep.subr.bf16.mxu1 %v1792_v0  ;;  %v1651_v20 = vld [vmem:[#allocation9 + $0x60] ss:$8 sps:$4 sm:$0xff]   ;;  %v1654_v21 = vld [vmem:[#allocation9 + $0x70] ss:$8 sps:$4 sm:$0xff]   ;;  %v1656_v22 = vld [vmem:[#allocation9 + $0x74] ss:$8 sps:$4 sm:$0xff]  }
  0x65   :  { %v219_v47 = vld [vmem:[#allocation10] ss:$0 sm:$0xff]  ;;  %v220_v50 = vld [vmem:[#allocation10 + $0x1] ss:$0 sm:$0xff] }
  0x67   :  { %1580 = vmatpush3.bf16.msra.mxu1 %v1631_v3 }
  0x68   :  { %1581 = vmatprep.subr.bf16.mxu1 %v1792_v0 }
  0x6b   :  { %1582 = vmatpush3.bf16.msra.mxu1 %v1632_v4 }
  0x6c   :  { %347 = vmatprep.subr.bf16.mxu1 %v1635_v7 }
  0x6e   :  { %1584 = vmatmul.mubr.msk.bf16.vlgmr.msra.gmra.mrb[0].mxu1 %vm175_vm1, %v142_v6 }
  0x6f   :  { %348 = vmatpush1.bf16.msra.mxu1 %v1633_v8  ;;  %379 = vmatprep.mubr.bf16.mxu1 %v1805_v23 }
  0x70   :  { %349 = vmatprep.subr.bf16.mxu1 %v1638_v9 }
  0x73   :  { %350 = vmatpush1.bf16.msra.mxu1 %v1636_v10 }
  0x74   :  { %351 = vmatprep.subr.bf16.mxu1 %v1641_v11 }
  0x77   :  { %352 = vmatpush1.bf16.msra.mxu1 %v1639_v12 }
  0x78   :  { %353 = vmatprep.subr.bf16.mxu1 %v1644_v13 }
  0x7b   :  { %354 = vmatpush1.bf16.msra.mxu1 %v1642_v14 }
  0x7c   :  { %355 = vmatprep.subr.bf16.mxu1 %v1647_v15 }
  0x7f   :  { %356 = vmatpush1.bf16.msra.mxu1 %v1645_v16 }
  0x80   :  { %357 = vmatprep.subr.bf16.mxu1 %v1650_v17 }
  0x83   :  { %358 = vmatpush1.bf16.msra.mxu1 %v1648_v18 }
  0x84   :  { %359 = vmatprep.subr.bf16.mxu1 %v1653_v19 }
  0x87   :  { %360 = vmatpush1.bf16.msra.mxu1 %v1651_v20 }
  0x88   :  { %361 = vmatprep.subr.bf16.mxu1 %v1656_v22 }
  0x8b   :  { %362 = vmatpush1.bf16.msra.mxu1 %v1654_v21 }
 0x141   :  { %v213_v24 = vpop.f32.mrb[0].mxu1 }
 0x142   :  { %v221_v25 = vrot.slane %v213_v24, 4  ;;  %v229_v26 = vmul.f32 %v213_v24, %v213_v24  ;;  %v1585_v27 = vpop.f32.mrb[1].mxu1 }
 0x143   :  { %v216_v28 = vpop.f32.mrb[2].mxu1 }
 0x144   :  { %v222_v29 = vadd.f32 %v221_v25, %v213_v24  ;;  %v230_v30 = vrot.slane %v229_v26, 4  ;;  %v1586_v31 = vpop.f32.mrb[3].mxu1 }
 0x146   :  { %v223_v32 = vrot.slane %v222_v29, 2  ;;  %v231_v33 = vadd.f32 %v230_v30, %v229_v26 }
 0x148   :  { %v224_v34 = vadd.f32 %v223_v32, %v222_v29  ;;  %v232_v35 = vrot.slane %v231_v33, 2 }
 0x14a   :  { %v225_v36 = vrot.slane %v224_v34, 1  ;;  %v233_v37 = vadd.f32 %v232_v35, %v231_v33 }
 0x14c   :  { %v226_v38 = vadd.f32 %v225_v36, %v224_v34  ;;  %v234_v39 = vrot.slane %v233_v37, 1  ;;  %v1806_v36 = vmov 1966171168  }
 0x14e   :  { %v228_v40 = vmul.f32 0.125, %v226_v38  ;;  %v235_v41 = vadd.f32 %v234_v39, %v233_v37  ;;  %v436_v37 = vunpack.c.l.s4 %v1806_v36  ;;  %v438_v38 = vlaneseq }
 0x150   :  { %v236_v42 = vmul.f32 0.125, %v235_v41  ;;  %v237_v43 = vmul.f32 %v228_v40, %v228_v40  ;;  %v437_v39 = vunpack.c.0.s8 %v436_v37 }
 0x152   :  { %v238_v44 = vsub.f32 %v236_v42, %v237_v43 }
 0x154   :  { %v239_v45 = vmax.f32 %v238_v44, 0.0 }
 0x156   :  { %v240_v46 = vadd.f32 1e-05, %v239_v45 }
 0x158   :  { %1657 = vrsqrt.f32 %v240_v46  ;;  %v389_v46 = vld [vmem:[#allocation10 + $0x2] ss:$8 sm:$0x3] }
 0x162   :  { %v1658_v48 = vpop.eup %1657 }
 0x163   :  { %v242_v49 = vmul.f32 %v1658_v48, %v219_v47 }
 0x165   :  { %v243_v51 = vmul.f32 %v242_v49, %v228_v40  ;;  %v245_v53 = vmul.f32 %v242_v49, %v213_v24  ;;  %v1916_v40 = vshrl.u32 %v438_v38, 7 }
 0x167   :  { %v244_v52 = vsub.f32 %v220_v50, %v243_v51  ;;  %v1919_v42 = vsub.s32 %v437_v39, %v1916_v40  ;;  %v1924_v48 = vsub.s32 0, %v1916_v40  ;;  %v1927_v49 = vsub.s32 1, %v1916_v40 }
 0x169   :  { %v246_v54 = vadd.f32 %v245_v53, %v244_v52 }
 0x16b   :  { %vm247_vm2 = vcmp.ge.f32.partialorder %v246_v54, 0.0  ;;  %v248_v55 = vmul.f32 0.01, %v246_v54 }
 0x16d   :  { %v249_v56 = vsel %vm247_vm2, %v246_v54, %v248_v55 }
 0x16e   :  { %v250_v57 = vpack.c.bf16 %v249_v56, %v249_v56 }
 0x170   :  { %380 = vmatmul.mubr.bf16.vlgmr.msra.gmra.mrb[4].mxu1 %v250_v57 }
 0x243   :  { %v1910_v58 = vpop.f32.mrb[4].mxu1 }
 0x244   :  { %v392_v59 = vrot.slane %v1910_v58, 4  ;;  %v406_v60 = vmul.f32 %v1910_v58, %v1910_v58  ;;  %v383_v61 = vpop.f32.mrb[5].mxu1 }
 0x245   :  { %v398_v62 = vrot.slane %v383_v61, 4  ;;  %v407_v63 = vmul.f32 %v383_v61, %v383_v61  ;;  %v385_v0 = vpop.f32.mrb[6].mxu1 }
 0x246   :  { %v393_v1 = vadd.f32 %v392_v59, %v1910_v58  ;;  %v408_v2 = vrot.slane %v406_v60, 4  ;;  %v386_v3 = vpop.f32.mrb[7].mxu1 }
 0x247   :  { %v399_v4 = vadd.f32 %v398_v62, %v383_v61  ;;  %v414_v5 = vrot.slane %v407_v63, 4 }
 0x248   :  { %v394_v6 = vrot.slane %v393_v1, 2  ;;  %v409_v7 = vadd.f32 %v408_v2, %v406_v60  ;;  %v391_v60 = vld [vmem:[#allocation10 + $0x3] ss:$8 sm:$0x3] }
 0x249   :  { %v400_v8 = vrot.slane %v399_v4, 2  ;;  %v415_v9 = vadd.f32 %v414_v5, %v407_v63 }
 0x24a   :  { %v395_v10 = vadd.f32 %v394_v6, %v393_v1  ;;  %v410_v11 = vrot.slane %v409_v7, 2 }
 0x24b   :  { %v401_v12 = vadd.f32 %v400_v8, %v399_v4  ;;  %v416_v13 = vrot.slane %v415_v9, 2 }
 0x24c   :  { %v396_v14 = vrot.slane %v395_v10, 1  ;;  %v411_v15 = vadd.f32 %v410_v11, %v409_v7 }
 0x24d   :  { %v402_v16 = vrot.slane %v401_v12, 1  ;;  %v417_v17 = vadd.f32 %v416_v13, %v415_v9 }
 0x24e   :  { %v397_v18 = vadd.f32 %v396_v14, %v395_v10  ;;  %v412_v19 = vrot.slane %v411_v15, 1 }
 0x24f   :  { %v403_v20 = vadd.f32 %v402_v16, %v401_v12  ;;  %v418_v21 = vrot.slane %v417_v17, 1 }
 0x250   :  { %v404_v22 = vmul.f32 0.125, %v397_v18  ;;  %v413_v23 = vadd.f32 %v412_v19, %v411_v15 }
 0x251   :  { %v405_v24 = vmul.f32 0.125, %v403_v20  ;;  %v419_v25 = vadd.f32 %v418_v21, %v417_v17 }
 0x252   :  { %v420_v26 = vmul.f32 0.125, %v413_v23  ;;  %v422_v27 = vmul.f32 %v404_v22, %v404_v22 }
 0x253   :  { %v421_v28 = vmul.f32 0.125, %v419_v25  ;;  %v423_v29 = vmul.f32 %v405_v24, %v405_v24 }
 0x254   :  { %v424_v30 = vsub.f32 %v420_v26, %v422_v27 }
 0x255   :  { %v425_v31 = vsub.f32 %v421_v28, %v423_v29 }
 0x256   :  { %v426_v32 = vmax.f32 %v424_v30, 0.0 }
 0x257   :  { %v427_v33 = vmax.f32 %v425_v31, 0.0 }
 0x258   :  { %v428_v34 = vadd.f32 1e-05, %v426_v32 }
 0x259   :  { %v429_v35 = vadd.f32 1e-05, %v427_v33 }
 0x25a   :  { %1659 = vrsqrt.f32 %v428_v34 }
 0x25b   :  { %1661 = vrsqrt.f32 %v429_v35 }
 0x264   :  { %v1660_v41 = vpop.eup %1659 }
 0x265   :  { %v1662_v43 = vpop.eup %1661 }
 0x266   :  { %v434_v44 = vcombine.low %v1660_v41, %v1662_v43 }
 0x268   :  { %v441_v45 = vrot.slane %v434_v44, %v1919_v42 }
 0x26a   :  { %v448_v47 = vrot.slane %v441_v45, %v1919_v42 }
 0x26c   :  { %v450_v50 = vmul.f32 %v448_v47, %v389_v46 }
 0x26e   :  { %v455_v51 = vrot.slane %v450_v50, %v1924_v48  ;;  %v459_v52 = vrot.slane %v450_v50, %v1927_v49 }
 0x270   :  { %v462_v53 = vmul.f32 %v455_v51, %v404_v22  ;;  %v463_v54 = vmul.f32 %v459_v52, %v405_v24  ;;  %v483_v55 = vmul.f32 %v455_v51, %v1910_v58  ;;  %v484_v56 = vmul.f32 %v459_v52, %v383_v61 }
 0x272   :  { %v466_v57 = vcombine.low %v462_v53, %v463_v54 }
 0x274   :  { %v473_v59 = vrot.slane %v466_v57, %v1919_v42 }
 0x276   :  { %v480_v62 = vrot.slane %v473_v59, %v1919_v42 }
 0x278   :  { %v482_v63 = vsub.f32 %v391_v60, %v480_v62 }
 0x27a   :  { %v489_v0 = vrot.slane %v482_v63, %v1924_v48  ;;  %v493_v1 = vrot.slane %v482_v63, %v1927_v49 }
 0x27c   :  { %v496_v2 = vadd.f32 %v489_v0, %v483_v55  ;;  %v497_v3 = vadd.f32 %v493_v1, %v484_v56 }
 0x27e   :  { %vm498_vm3 = vcmp.ge.f32.partialorder %v496_v2, 0.0  ;;  %vm499_vm4 = vcmp.ge.f32.partialorder %v497_v3, 0.0  ;;  %v500_v4 = vmul.f32 0.01, %v496_v2  ;;  %v501_v5 = vmul.f32 0.01, %v497_v3 }
 0x280   :  { %v1936_v6 = vsel %vm498_vm3, %v496_v2, %v500_v4  ;;  %v503_v58 = vsel %vm499_vm4, %v497_v3, %v501_v5 }
 0x281   :  { %1779 = dma.done.wait [#allocation4], 8192 }
 0x282   :  { %1780 = vsyncadd [#allocation4], 4294959104  ;;  %v509_v61 = vpack.c.bf16 %v503_v58, %v503_v58  ;;  %v511_v7 = vld [vmem:[#allocation2 + $0x8] sm:$0xff]  ;;  %v513_v8 = vld [vmem:[#allocation2 + $0x18] sm:$0xff] }
 0x283   :  { %v510_v9 = vld [vmem:[#allocation2] sm:$0xff]  ;;  %574 = vmatprep.subr.bf16.mxu0 %v511_v7  ;;  %615 = vmatprep.subr.bf16.mxu1 %v513_v8  ;;  %v512_v10 = vld [vmem:[#allocation2 + $0x10] sm:$0xff]  ;;  %v515_v11 = vld [vmem:[#allocation2 + $0x28] sm:$0xff] }
 0x284   :  { %606 = vmatprep.mubr.bf16.mxu0 %v509_v61  ;;  %647 = vmatprep.mubr.bf16.mxu1 %v509_v61  ;;  %v517_v12 = vld [vmem:[#allocation2 + $0x38] sm:$0xff]  ;;  %v514_v13 = vld [vmem:[#allocation2 + $0x20] sm:$0xff]  ;;  %v516_v14 = vld [vmem:[#allocation2 + $0x30] sm:$0xff] }
 0x285   :  { %575 = vmatpush1.bf16.msra.mxu0 %v510_v9  ;;  %616 = vmatpush1.bf16.msra.mxu1 %v512_v10  ;;  %v519_v15 = vld [vmem:[#allocation2 + $0x48] sm:$0xff]  ;;  %v521_v16 = vld [vmem:[#allocation2 + $0x58] sm:$0xff]  ;;  %v518_v17 = vld [vmem:[#allocation2 + $0x40] sm:$0xff] }
 0x286   :  { %576 = vmatprep.subr.bf16.mxu0 %v515_v11  ;;  %617 = vmatprep.subr.bf16.mxu1 %v517_v12  ;;  %v520_v18 = vld [vmem:[#allocation2 + $0x50] sm:$0xff]  ;;  %v523_v19 = vld [vmem:[#allocation2 + $0x68] sm:$0xff]  ;;  %v525_v20 = vld [vmem:[#allocation2 + $0x78] sm:$0xff]  ;;  %v508_v12 = vpack.c.bf16 %v1936_v6, %v1936_v6 }
 0x287   :  { %v522_v21 = vld [vmem:[#allocation2 + $0x60] sm:$0xff]  ;;  %v524_v22 = vld [vmem:[#allocation2 + $0x70] sm:$0xff]  ;;  %v527_v23 = vld [vmem:[#allocation2 + $0x88] sm:$0xff] }
 0x288   :  { %v529_v24 = vld [vmem:[#allocation2 + $0x98] sm:$0xff]  ;;  %v526_v25 = vld [vmem:[#allocation2 + $0x80] sm:$0xff]  ;;  %v528_v26 = vld [vmem:[#allocation2 + $0x90] sm:$0xff] }
 0x289   :  { %577 = vmatpush1.bf16.msra.mxu0 %v514_v13  ;;  %618 = vmatpush1.bf16.msra.mxu1 %v516_v14  ;;  %v531_v27 = vld [vmem:[#allocation2 + $0xa8] sm:$0xff]  ;;  %v533_v28 = vld [vmem:[#allocation2 + $0xb8] sm:$0xff]  ;;  %v530_v29 = vld [vmem:[#allocation2 + $0xa0] sm:$0xff] }
 0x28a   :  { %578 = vmatprep.subr.bf16.mxu0 %v519_v15  ;;  %619 = vmatprep.subr.bf16.mxu1 %v521_v16  ;;  %v532_v30 = vld [vmem:[#allocation2 + $0xb0] sm:$0xff]  ;;  %v535_v31 = vld [vmem:[#allocation2 + $0xc8] sm:$0xff]  ;;  %v537_v32 = vld [vmem:[#allocation2 + $0xd8] sm:$0xff] }
 0x28b   :  { %v534_v33 = vld [vmem:[#allocation2 + $0xc0] sm:$0xff]  ;;  %v536_v34 = vld [vmem:[#allocation2 + $0xd0] sm:$0xff]  ;;  %v539_v35 = vld [vmem:[#allocation2 + $0xe8] sm:$0xff] }
 0x28c   :  { %v541_v36 = vld [vmem:[#allocation2 + $0xf8] sm:$0xff]  ;;  %v538_v37 = vld [vmem:[#allocation2 + $0xe0] sm:$0xff]  ;;  %v540_v38 = vld [vmem:[#allocation2 + $0xf0] sm:$0xff] }
 0x28d   :  { %579 = vmatpush1.bf16.msra.mxu0 %v518_v17  ;;  %620 = vmatpush1.bf16.msra.mxu1 %v520_v18  ;;  %v543_v39 = vld [vmem:[#allocation2 + $0x108] sm:$0xff]  ;;  %v545_v41 = vld [vmem:[#allocation2 + $0x118] sm:$0xff]  ;;  %v542_v43 = vld [vmem:[#allocation2 + $0x100] sm:$0xff] }
 0x28e   :  { %580 = vmatprep.subr.bf16.mxu0 %v523_v19  ;;  %621 = vmatprep.subr.bf16.mxu1 %v525_v20  ;;  %v544_v44 = vld [vmem:[#allocation2 + $0x110] sm:$0xff]  ;;  %v547_v45 = vld [vmem:[#allocation2 + $0x128] sm:$0xff]  ;;  %v549_v46 = vld [vmem:[#allocation2 + $0x138] sm:$0xff] }
 0x28f   :  { %v546_v47 = vld [vmem:[#allocation2 + $0x120] sm:$0xff]  ;;  %v548_v50 = vld [vmem:[#allocation2 + $0x130] sm:$0xff]  ;;  %v551_v51 = vld [vmem:[#allocation2 + $0x148] sm:$0xff] }
 0x290   :  { %v553_v52 = vld [vmem:[#allocation2 + $0x158] sm:$0xff]  ;;  %v550_v53 = vld [vmem:[#allocation2 + $0x140] sm:$0xff]  ;;  %v552_v54 = vld [vmem:[#allocation2 + $0x150] sm:$0xff] }
 0x291   :  { %581 = vmatpush1.bf16.msra.mxu0 %v522_v21  ;;  %622 = vmatpush1.bf16.msra.mxu1 %v524_v22  ;;  %v555_v55 = vld [vmem:[#allocation2 + $0x168] sm:$0xff]  ;;  %v557_v56 = vld [vmem:[#allocation2 + $0x178] sm:$0xff]  ;;  %v554_v57 = vld [vmem:[#allocation2 + $0x160] sm:$0xff] }
 0x292   :  { %582 = vmatprep.subr.bf16.mxu0 %v527_v23  ;;  %623 = vmatprep.subr.bf16.mxu1 %v529_v24  ;;  %v556_v59 = vld [vmem:[#allocation2 + $0x170] sm:$0xff]  ;;  %v559_v60 = vld [vmem:[#allocation2 + $0x188] sm:$0xff]  ;;  %v561_v62 = vld [vmem:[#allocation2 + $0x198] sm:$0xff] }
 0x293   :  { %v558_v63 = vld [vmem:[#allocation2 + $0x180] sm:$0xff]  ;;  %v560_v0 = vld [vmem:[#allocation2 + $0x190] sm:$0xff]  ;;  %v563_v1 = vld [vmem:[#allocation2 + $0x1a8] sm:$0xff] }
 0x294   :  { %v565_v2 = vld [vmem:[#allocation2 + $0x1b8] sm:$0xff]  ;;  %v562_v3 = vld [vmem:[#allocation2 + $0x1a0] sm:$0xff]  ;;  %v564_v4 = vld [vmem:[#allocation2 + $0x1b0] sm:$0xff] }
 0x295   :  { %583 = vmatpush1.bf16.msra.mxu0 %v526_v25  ;;  %624 = vmatpush1.bf16.msra.mxu1 %v528_v26  ;;  %v567_v5 = vld [vmem:[#allocation2 + $0x1c8] sm:$0xff]  ;;  %v569_v58 = vld [vmem:[#allocation2 + $0x1d8] sm:$0xff]  ;;  %v566_v61 = vld [vmem:[#allocation2 + $0x1c0] sm:$0xff] }
 0x296   :  { %584 = vmatprep.subr.bf16.mxu0 %v531_v27  ;;  %625 = vmatprep.subr.bf16.mxu1 %v533_v28  ;;  %v568_v7 = vld [vmem:[#allocation2 + $0x1d0] sm:$0xff]  ;;  %v571_v8 = vld [vmem:[#allocation2 + $0x1e8] sm:$0xff]  ;;  %v573_v9 = vld [vmem:[#allocation2 + $0x1f8] sm:$0xff] }
 0x297   :  { %v570_v10 = vld [vmem:[#allocation2 + $0x1e0] sm:$0xff]  ;;  %v572_v11 = vld [vmem:[#allocation2 + $0x1f0] sm:$0xff] }
 0x299   :  { %585 = vmatpush1.bf16.msra.mxu0 %v530_v29  ;;  %626 = vmatpush1.bf16.msra.mxu1 %v532_v30 }
 0x29a   :  { %586 = vmatprep.subr.bf16.mxu0 %v535_v31  ;;  %627 = vmatprep.subr.bf16.mxu1 %v537_v32 }
 0x29d   :  { %587 = vmatpush1.bf16.msra.mxu0 %v534_v33  ;;  %628 = vmatpush1.bf16.msra.mxu1 %v536_v34 }
 0x29e   :  { %588 = vmatprep.subr.bf16.mxu0 %v539_v35  ;;  %629 = vmatprep.subr.bf16.mxu1 %v541_v36 }
 0x2a1   :  { %589 = vmatpush1.bf16.msra.mxu0 %v538_v37  ;;  %630 = vmatpush1.bf16.msra.mxu1 %v540_v38 }
 0x2a2   :  { %590 = vmatprep.subr.bf16.mxu0 %v543_v39  ;;  %631 = vmatprep.subr.bf16.mxu1 %v545_v41 }
 0x2a5   :  { %591 = vmatpush1.bf16.msra.mxu0 %v542_v43  ;;  %632 = vmatpush1.bf16.msra.mxu1 %v544_v44 }
 0x2a6   :  { %592 = vmatprep.subr.bf16.mxu0 %v547_v45  ;;  %633 = vmatprep.subr.bf16.mxu1 %v549_v46 }
 0x2a9   :  { %593 = vmatpush1.bf16.msra.mxu0 %v546_v47  ;;  %634 = vmatpush1.bf16.msra.mxu1 %v548_v50 }
 0x2aa   :  { %594 = vmatprep.subr.bf16.mxu0 %v551_v51  ;;  %635 = vmatprep.subr.bf16.mxu1 %v553_v52 }
 0x2ad   :  { %595 = vmatpush1.bf16.msra.mxu0 %v550_v53  ;;  %636 = vmatpush1.bf16.msra.mxu1 %v552_v54 }
 0x2ae   :  { %596 = vmatprep.subr.bf16.mxu0 %v555_v55  ;;  %637 = vmatprep.subr.bf16.mxu1 %v557_v56 }
 0x2b1   :  { %597 = vmatpush1.bf16.msra.mxu0 %v554_v57  ;;  %638 = vmatpush1.bf16.msra.mxu1 %v556_v59 }
 0x2b2   :  { %598 = vmatprep.subr.bf16.mxu0 %v559_v60  ;;  %639 = vmatprep.subr.bf16.mxu1 %v561_v62 }
 0x2b5   :  { %599 = vmatpush1.bf16.msra.mxu0 %v558_v63  ;;  %640 = vmatpush1.bf16.msra.mxu1 %v560_v0 }
 0x2b6   :  { %600 = vmatprep.subr.bf16.mxu0 %v563_v1  ;;  %641 = vmatprep.subr.bf16.mxu1 %v565_v2 }
 0x2b9   :  { %601 = vmatpush1.bf16.msra.mxu0 %v562_v3  ;;  %642 = vmatpush1.bf16.msra.mxu1 %v564_v4 }
 0x2ba   :  { %602 = vmatprep.subr.bf16.mxu0 %v567_v5  ;;  %643 = vmatprep.subr.bf16.mxu1 %v569_v58 }
 0x2bd   :  { %603 = vmatpush1.bf16.msra.mxu0 %v566_v61  ;;  %644 = vmatpush1.bf16.msra.mxu1 %v568_v7 }
 0x2be   :  { %604 = vmatprep.subr.bf16.mxu0 %v571_v8  ;;  %645 = vmatprep.subr.bf16.mxu1 %v573_v9 }
 0x2c1   :  { %605 = vmatpush1.bf16.msra.mxu0 %v570_v10  ;;  %646 = vmatpush1.bf16.msra.mxu1 %v572_v11 }
 0x2c4   :  { %607 = vmatmul.mubr.bf16.vlgmr.msra.gmra.mrb[0].mxu0 %v508_v12  ;;  %648 = vmatmul.mubr.bf16.vlgmr.msra.gmra.mrb[8].mxu1 %v508_v12 }
 0x397   :  { %v1940_v13 = vpop.f32.mrb[0].mxu0  ;;  %v1942_v14 = vpop.f32.mrb[8].mxu1 }
 0x398   :  { %v660_v15 = vrot.slane %v1940_v13, 4  ;;  %v688_v16 = vmul.f32 %v1940_v13, %v1940_v13  ;;  %v672_v17 = vrot.slane %v1942_v14, 4  ;;  %v690_v18 = vmul.f32 %v1942_v14, %v1942_v14  ;;  %v1950_v19 = vpop.f32.mrb[1].mxu0  ;;  %v1952_v6 = vpop.f32.mrb[9].mxu1 }
 0x399   :  { %v666_v20 = vrot.slane %v1950_v19, 4  ;;  %v689_v21 = vmul.f32 %v1950_v19, %v1950_v19  ;;  %v678_v22 = vrot.slane %v1952_v6, 4  ;;  %v691_v23 = vmul.f32 %v1952_v6, %v1952_v6  ;;  %v612_v24 = vpop.f32.mrb[2].mxu0  ;;  %v653_v25 = vpop.f32.mrb[10].mxu1 }
 0x39a   :  { %v661_v26 = vadd.f32 %v660_v15, %v1940_v13  ;;  %v692_v27 = vrot.slane %v688_v16, 4  ;;  %v673_v28 = vadd.f32 %v672_v17, %v1942_v14  ;;  %v704_v29 = vrot.slane %v690_v18, 4  ;;  %v613_v30 = vpop.f32.mrb[3].mxu0  ;;  %v654_v31 = vpop.f32.mrb[11].mxu1 }
 0x39b   :  { %v667_v32 = vadd.f32 %v666_v20, %v1950_v19  ;;  %v698_v33 = vrot.slane %v689_v21, 4  ;;  %v679_v34 = vadd.f32 %v678_v22, %v1952_v6  ;;  %v710_v35 = vrot.slane %v691_v23, 4 }
 0x39c   :  { %v662_v36 = vrot.slane %v661_v26, 2  ;;  %v693_v37 = vadd.f32 %v692_v27, %v688_v16  ;;  %v674_v38 = vrot.slane %v673_v28, 2  ;;  %v705_v39 = vadd.f32 %v704_v29, %v690_v18 }
 0x39d   :  { %v668_v41 = vrot.slane %v667_v32, 2  ;;  %v699_v43 = vadd.f32 %v698_v33, %v689_v21  ;;  %v680_v44 = vrot.slane %v679_v34, 2  ;;  %v711_v45 = vadd.f32 %v710_v35, %v691_v23 }
 0x39e   :  { %v663_v46 = vadd.f32 %v662_v36, %v661_v26  ;;  %v694_v47 = vrot.slane %v693_v37, 2  ;;  %v675_v50 = vadd.f32 %v674_v38, %v673_v28  ;;  %v706_v51 = vrot.slane %v705_v39, 2 }
 0x39f   :  { %v669_v52 = vadd.f32 %v668_v41, %v667_v32  ;;  %v700_v53 = vrot.slane %v699_v43, 2  ;;  %v681_v54 = vadd.f32 %v680_v44, %v679_v34  ;;  %v712_v55 = vrot.slane %v711_v45, 2 }
 0x3a0   :  { %v664_v56 = vrot.slane %v663_v46, 1  ;;  %v695_v57 = vadd.f32 %v694_v47, %v693_v37  ;;  %v676_v59 = vrot.slane %v675_v50, 1  ;;  %v707_v60 = vadd.f32 %v706_v51, %v705_v39 }
 0x3a1   :  { %v670_v62 = vrot.slane %v669_v52, 1  ;;  %v701_v63 = vadd.f32 %v700_v53, %v699_v43  ;;  %v682_v0 = vrot.slane %v681_v54, 1  ;;  %v713_v1 = vadd.f32 %v712_v55, %v711_v45  ;;  %v657_v53 = vld [vmem:[#allocation10 + $0x4] ss:$8 sm:$0xf] }
 0x3a2   :  { %v665_v2 = vadd.f32 %v664_v56, %v663_v46  ;;  %v696_v3 = vrot.slane %v695_v57, 1  ;;  %v677_v4 = vadd.f32 %v676_v59, %v675_v50  ;;  %v708_v5 = vrot.slane %v707_v60, 1 }
 0x3a3   :  { %v671_v58 = vadd.f32 %v670_v62, %v669_v52  ;;  %v702_v61 = vrot.slane %v701_v63, 1  ;;  %v683_v7 = vadd.f32 %v682_v0, %v681_v54  ;;  %v714_v8 = vrot.slane %v713_v1, 1 }
 0x3a4   :  { %v684_v9 = vmul.f32 0.125, %v665_v2  ;;  %v697_v10 = vadd.f32 %v696_v3, %v695_v57  ;;  %v686_v11 = vmul.f32 0.125, %v677_v4  ;;  %v709_v12 = vadd.f32 %v708_v5, %v707_v60 }
 0x3a5   :  { %v685_v15 = vmul.f32 0.125, %v671_v58  ;;  %v703_v16 = vadd.f32 %v702_v61, %v701_v63  ;;  %v687_v17 = vmul.f32 0.125, %v683_v7  ;;  %v715_v18 = vadd.f32 %v714_v8, %v713_v1 }
 0x3a6   :  { %v716_v20 = vmul.f32 0.125, %v697_v10  ;;  %v720_v21 = vmul.f32 %v684_v9, %v684_v9  ;;  %v718_v22 = vmul.f32 0.125, %v709_v12  ;;  %v722_v23 = vmul.f32 %v686_v11, %v686_v11 }
 0x3a7   :  { %v717_v24 = vmul.f32 0.125, %v703_v16  ;;  %v721_v25 = vmul.f32 %v685_v15, %v685_v15  ;;  %v719_v26 = vmul.f32 0.125, %v715_v18  ;;  %v723_v27 = vmul.f32 %v687_v17, %v687_v17  ;;  %v659_v18 = vld [vmem:[#allocation10 + $0x5] ss:$8 sm:$0xf] }
 0x3a8   :  { %v724_v28 = vsub.f32 %v716_v20, %v720_v21  ;;  %v726_v29 = vsub.f32 %v718_v22, %v722_v23  ;;  %v1968_v55 = vsub.s32 2, %v1916_v40  ;;  %v1971_v56 = vsub.s32 3, %v1916_v40 }
 0x3a9   :  { %v725_v30 = vsub.f32 %v717_v24, %v721_v25  ;;  %v727_v31 = vsub.f32 %v719_v26, %v723_v27 }
 0x3aa   :  { %v728_v32 = vmax.f32 %v724_v28, 0.0  ;;  %v730_v33 = vmax.f32 %v726_v29, 0.0 }
 0x3ab   :  { %v729_v34 = vmax.f32 %v725_v30, 0.0  ;;  %v731_v35 = vmax.f32 %v727_v31, 0.0 }
 0x3ac   :  { %v732_v36 = vadd.f32 1e-05, %v728_v32  ;;  %v734_v37 = vadd.f32 1e-05, %v730_v33 }
 0x3ad   :  { %v733_v38 = vadd.f32 1e-05, %v729_v34  ;;  %v735_v39 = vadd.f32 1e-05, %v731_v35 }
 0x3ae   :  { %1663 = vrsqrt.f32 %v732_v36 }
 0x3af   :  { %1665 = vrsqrt.f32 %v734_v37 }
 0x3b0   :  { %1667 = vrsqrt.f32 %v733_v38 }
 0x3b1   :  { %1669 = vrsqrt.f32 %v735_v39 }
 0x3b8   :  { %v1664_v41 = vpop.eup %1663 }
 0x3b9   :  { %v1666_v43 = vpop.eup %1665 }
 0x3ba   :  { %v1668_v44 = vpop.eup %1667 }
 0x3bb   :  { %v1670_v45 = vpop.eup %1669  ;;  %v744_v46 = vcombine.low %v1664_v41, %v1668_v44 }
 0x3bc   :  { %v745_v47 = vcombine.low %v1666_v43, %v1670_v45 }
 0x3bd   :  { %v752_v50 = vrot.slane %v744_v46, %v1919_v42 }
 0x3be   :  { %v759_v51 = vrot.slane %v745_v47, %v1919_v42 }
 0x3c0   :  { %v760_v52 = vcombine.low %v752_v50, %v759_v51 }
 0x3c2   :  { %v767_v54 = vrot.slane %v760_v52, %v1919_v42 }
 0x3c4   :  { %v769_v57 = vmul.f32 %v767_v54, %v657_v53 }
 0x3c6   :  { %v774_v59 = vrot.slane %v769_v57, %v1924_v48  ;;  %v778_v60 = vrot.slane %v769_v57, %v1927_v49  ;;  %v782_v62 = vrot.slane %v769_v57, %v1968_v55  ;;  %v786_v63 = vrot.slane %v769_v57, %v1971_v56 }
 0x3c8   :  { %v791_v0 = vmul.f32 %v774_v59, %v684_v9  ;;  %v792_v1 = vmul.f32 %v778_v60, %v685_v15  ;;  %v793_v2 = vmul.f32 %v782_v62, %v686_v11  ;;  %v794_v3 = vmul.f32 %v786_v63, %v687_v17 }
 0x3c9   :  { %v825_v4 = vmul.f32 %v774_v59, %v1940_v13  ;;  %v826_v5 = vmul.f32 %v778_v60, %v1950_v19  ;;  %v827_v58 = vmul.f32 %v782_v62, %v1942_v14  ;;  %v828_v61 = vmul.f32 %v786_v63, %v1952_v6 }
 0x3ca   :  { %v799_v7 = vcombine.low %v791_v0, %v792_v1  ;;  %v800_v8 = vcombine.low %v793_v2, %v794_v3 }
 0x3cc   :  { %v807_v10 = vrot.slane %v799_v7, %v1919_v42  ;;  %v814_v12 = vrot.slane %v800_v8, %v1919_v42 }
 0x3ce   :  { %v815_v16 = vcombine.low %v807_v10, %v814_v12 }
 0x3d0   :  { %v822_v9 = vrot.slane %v815_v16, %v1919_v42 }
 0x3d2   :  { %v824_v11 = vsub.f32 %v659_v18, %v822_v9 }
 0x3d4   :  { %v833_v15 = vrot.slane %v824_v11, %v1924_v48  ;;  %v837_v13 = vrot.slane %v824_v11, %v1927_v49  ;;  %v841_v19 = vrot.slane %v824_v11, %v1968_v55  ;;  %v845_v14 = vrot.slane %v824_v11, %v1971_v56 }
 0x3d6   :  { %v850_v6 = vadd.f32 %v833_v15, %v825_v4  ;;  %v851_v17 = vadd.f32 %v837_v13, %v826_v5  ;;  %v852_v20 = vadd.f32 %v841_v19, %v827_v58  ;;  %v853_v21 = vadd.f32 %v845_v14, %v828_v61 }
 0x3d8   :  { %vm854_vm5 = vcmp.ge.f32.partialorder %v850_v6, 0.0  ;;  %vm855_vm6 = vcmp.ge.f32.partialorder %v851_v17, 0.0  ;;  %vm856_vm7 = vcmp.ge.f32.partialorder %v852_v20, 0.0  ;;  %vm857_vm8 = vcmp.ge.f32.partialorder %v853_v21, 0.0 }
 0x3d9   :  { %v858_v22 = vmul.f32 0.01, %v850_v6  ;;  %v859_v23 = vmul.f32 0.01, %v851_v17  ;;  %v860_v42 = vmul.f32 0.01, %v852_v20 }
 0x3da   :  { %v861_v24 = vmul.f32 0.01, %v853_v21 }
 0x3db   :  { %v1988_v25 = vsel %vm854_vm5, %v850_v6, %v858_v22  ;;  %v863_v26 = vsel %vm855_vm6, %v851_v17, %v859_v23  ;;  %v1990_v27 = vsel %vm856_vm7, %v852_v20, %v860_v42 }
 0x3dc   :  { %v1992_v28 = vsel %vm857_vm8, %v853_v21, %v861_v24 }
 0x3dd   :  { %1781 = dma.done.wait [#allocation4 + $0x1], 28672 }
 0x3de   :  { %1782 = vsyncadd [#allocation4 + $0x1], 4294938624  ;;  %v1994_v29 = vpack.c.bf16 %v863_v26, %v863_v26  ;;  %v875_v30 = vld [vmem:[#allocation3 + $0x8] sm:$0xff]  ;;  %v877_v31 = vld [vmem:[#allocation3 + $0x18] sm:$0xff]  ;;  %vm1477_vm9 = vcmask 130048  }
 0x3df   :  { %v874_v32 = vld [vmem:[#allocation3] sm:$0xff]  ;;  %1138 = vmatprep.subr.bf16.mxu0 %v875_v30  ;;  %1220 = vmatprep.subr.bf16.mxu1 %v877_v31  ;;  %v876_v33 = vld [vmem:[#allocation3 + $0x10] sm:$0xff]  ;;  %v881_v36 = vld [vmem:[#allocation3 + $0x38] sm:$0xff] }
 0x3e0   :  { %1170 = vmatprep.mubr.bf16.mxu0 %v1994_v29  ;;  %1252 = vmatprep.mubr.bf16.mxu1 %v1994_v29  ;;  %v882_v34 = vld [vmem:[#allocation3 + $0x40] sm:$0xff]  ;;  %v884_v35 = vld [vmem:[#allocation3 + $0x50] sm:$0xff]  ;;  %v883_v37 = vld [vmem:[#allocation3 + $0x48] sm:$0xff] }
 0x3e1   :  { %1139 = vmatpush1.bf16.msra.mxu0 %v874_v32  ;;  %1221 = vmatpush1.bf16.msra.mxu1 %v876_v33  ;;  %v889_v38 = vld [vmem:[#allocation3 + $0x78] sm:$0xff]  ;;  %v891_v39 = vld [vmem:[#allocation3 + $0x88] sm:$0xff]  ;;  %v888_v41 = vld [vmem:[#allocation3 + $0x70] sm:$0xff] }
 0x3e2   :  { %1140 = vmatprep.subr.bf16.mxu0 %v882_v34  ;;  %1222 = vmatprep.subr.bf16.mxu1 %v884_v35  ;;  %v890_v43 = vld [vmem:[#allocation3 + $0x80] sm:$0xff]  ;;  %v896_v44 = vld [vmem:[#allocation3 + $0xb0] sm:$0xff]  ;;  %v895_v46 = vld [vmem:[#allocation3 + $0xa8] sm:$0xff] }
 0x3e3   :  { %v898_v45 = vld [vmem:[#allocation3 + $0xc0] sm:$0xff]  ;;  %v897_v47 = vld [vmem:[#allocation3 + $0xb8] sm:$0xff]  ;;  %v903_v50 = vld [vmem:[#allocation3 + $0xe8] sm:$0xff] }
 0x3e4   :  { %v905_v51 = vld [vmem:[#allocation3 + $0xf8] sm:$0xff]  ;;  %v902_v52 = vld [vmem:[#allocation3 + $0xe0] sm:$0xff]  ;;  %v904_v53 = vld [vmem:[#allocation3 + $0xf0] sm:$0xff] }
 0x3e5   :  { %1141 = vmatpush1.bf16.msra.mxu0 %v881_v36  ;;  %1223 = vmatpush1.bf16.msra.mxu1 %v883_v37  ;;  %v910_v54 = vld [vmem:[#allocation3 + $0x120] sm:$0xff]  ;;  %v912_v57 = vld [vmem:[#allocation3 + $0x130] sm:$0xff]  ;;  %v909_v59 = vld [vmem:[#allocation3 + $0x118] sm:$0xff] }
 0x3e6   :  { %1142 = vmatprep.subr.bf16.mxu0 %v889_v38  ;;  %1224 = vmatprep.subr.bf16.mxu1 %v891_v39  ;;  %v911_v60 = vld [vmem:[#allocation3 + $0x128] sm:$0xff]  ;;  %v917_v62 = vld [vmem:[#allocation3 + $0x158] sm:$0xff]  ;;  %v916_v0 = vld [vmem:[#allocation3 + $0x150] sm:$0xff] }
 0x3e7   :  { %v919_v63 = vld [vmem:[#allocation3 + $0x168] sm:$0xff]  ;;  %v918_v1 = vld [vmem:[#allocation3 + $0x160] sm:$0xff]  ;;  %v924_v2 = vld [vmem:[#allocation3 + $0x190] sm:$0xff] }
 0x3e8   :  { %v926_v3 = vld [vmem:[#allocation3 + $0x1a0] sm:$0xff]  ;;  %v923_v4 = vld [vmem:[#allocation3 + $0x188] sm:$0xff]  ;;  %v925_v5 = vld [vmem:[#allocation3 + $0x198] sm:$0xff] }
 0x3e9   :  { %1143 = vmatpush1.bf16.msra.mxu0 %v888_v41  ;;  %1225 = vmatpush1.bf16.msra.mxu1 %v890_v43  ;;  %v931_v58 = vld [vmem:[#allocation3 + $0x1c8] sm:$0xff]  ;;  %v933_v61 = vld [vmem:[#allocation3 + $0x1d8] sm:$0xff]  ;;  %v930_v7 = vld [vmem:[#allocation3 + $0x1c0] sm:$0xff]  ;;  %v2000_v43 = vpack.c.bf16 %v1988_v25, %v1988_v25 }
 0x3ea   :  { %1144 = vmatprep.subr.bf16.mxu0 %v896_v44  ;;  %1226 = vmatprep.subr.bf16.mxu1 %v898_v45  ;;  %v932_v8 = vld [vmem:[#allocation3 + $0x1d0] sm:$0xff]  ;;  %v938_v10 = vld [vmem:[#allocation3 + $0x200] sm:$0xff]  ;;  %v937_v16 = vld [vmem:[#allocation3 + $0x1f8] sm:$0xff] }
 0x3eb   :  { %v940_v12 = vld [vmem:[#allocation3 + $0x210] sm:$0xff]  ;;  %v939_v18 = vld [vmem:[#allocation3 + $0x208] sm:$0xff]  ;;  %v945_v9 = vld [vmem:[#allocation3 + $0x238] sm:$0xff] }
 0x3ec   :  { %v947_v11 = vld [vmem:[#allocation3 + $0x248] sm:$0xff]  ;;  %v944_v15 = vld [vmem:[#allocation3 + $0x230] sm:$0xff]  ;;  %v946_v13 = vld [vmem:[#allocation3 + $0x240] sm:$0xff] }
 0x3ed   :  { %1145 = vmatpush1.bf16.msra.mxu0 %v895_v46  ;;  %1227 = vmatpush1.bf16.msra.mxu1 %v897_v47  ;;  %v952_v19 = vld [vmem:[#allocation3 + $0x270] sm:$0xff]  ;;  %v954_v14 = vld [vmem:[#allocation3 + $0x280] sm:$0xff]  ;;  %v951_v6 = vld [vmem:[#allocation3 + $0x268] sm:$0xff] }
 0x3ee   :  { %1146 = vmatprep.subr.bf16.mxu0 %v903_v50  ;;  %1228 = vmatprep.subr.bf16.mxu1 %v905_v51  ;;  %v953_v17 = vld [vmem:[#allocation3 + $0x278] sm:$0xff]  ;;  %v959_v20 = vld [vmem:[#allocation3 + $0x2a8] sm:$0xff]  ;;  %v958_v22 = vld [vmem:[#allocation3 + $0x2a0] sm:$0xff]  ;;  %v2004_v50 = vpack.c.bf16 %v1992_v28, %v1992_v28 }
 0x3ef   :  { %v961_v21 = vld [vmem:[#allocation3 + $0x2b8] sm:$0xff]  ;;  %v960_v23 = vld [vmem:[#allocation3 + $0x2b0] sm:$0xff]  ;;  %v966_v42 = vld [vmem:[#allocation3 + $0x2e0] sm:$0xff] }
 0x3f0   :  { %v968_v24 = vld [vmem:[#allocation3 + $0x2f0] sm:$0xff]  ;;  %v965_v26 = vld [vmem:[#allocation3 + $0x2d8] sm:$0xff]  ;;  %v967_v30 = vld [vmem:[#allocation3 + $0x2e8] sm:$0xff] }
 0x3f1   :  { %1147 = vmatpush1.bf16.msra.mxu0 %v902_v52  ;;  %1229 = vmatpush1.bf16.msra.mxu1 %v904_v53  ;;  %v973_v31 = vld [vmem:[#allocation3 + $0x318] sm:$0xff]  ;;  %v975_v32 = vld [vmem:[#allocation3 + $0x328] sm:$0xff]  ;;  %v972_v33 = vld [vmem:[#allocation3 + $0x310] sm:$0xff] }
 0x3f2   :  { %1148 = vmatprep.subr.bf16.mxu0 %v910_v54  ;;  %1230 = vmatprep.subr.bf16.mxu1 %v912_v57  ;;  %v974_v34 = vld [vmem:[#allocation3 + $0x320] sm:$0xff]  ;;  %v980_v35 = vld [vmem:[#allocation3 + $0x350] sm:$0xff]  ;;  %v979_v37 = vld [vmem:[#allocation3 + $0x348] sm:$0xff] }
 0x3f3   :  { %v982_v36 = vld [vmem:[#allocation3 + $0x360] sm:$0xff]  ;;  %v981_v38 = vld [vmem:[#allocation3 + $0x358] sm:$0xff]  ;;  %v987_v39 = vld [vmem:[#allocation3 + $0x388] sm:$0xff] }
 0x3f4   :  { %v989_v41 = vld [vmem:[#allocation3 + $0x398] sm:$0xff]  ;;  %v986_v44 = vld [vmem:[#allocation3 + $0x380] sm:$0xff]  ;;  %v988_v45 = vld [vmem:[#allocation3 + $0x390] sm:$0xff] }
 0x3f5   :  { %1149 = vmatpush1.bf16.msra.mxu0 %v909_v59  ;;  %1231 = vmatpush1.bf16.msra.mxu1 %v911_v60  ;;  %v994_v46 = vld [vmem:[#allocation3 + $0x3c0] sm:$0xff]  ;;  %v996_v47 = vld [vmem:[#allocation3 + $0x3d0] sm:$0xff]  ;;  %v993_v25 = vld [vmem:[#allocation3 + $0x3b8] sm:$0xff] }
 0x3f6   :  { %1150 = vmatprep.subr.bf16.mxu0 %v917_v62  ;;  %1232 = vmatprep.subr.bf16.mxu1 %v919_v63  ;;  %v995_v51 = vld [vmem:[#allocation3 + $0x3c8] sm:$0xff]  ;;  %v1001_v52 = vld [vmem:[#allocation3 + $0x3f8] sm:$0xff]  ;;  %v1000_v28 = vld [vmem:[#allocation3 + $0x3f0] sm:$0xff] }
 0x3f7   :  { %v1003_v53 = vld [vmem:[#allocation3 + $0x408] sm:$0xff]  ;;  %v1002_v54 = vld [vmem:[#allocation3 + $0x400] sm:$0xff]  ;;  %v1008_v57 = vld [vmem:[#allocation3 + $0x430] sm:$0xff] }
 0x3f8   :  { %v1010_v59 = vld [vmem:[#allocation3 + $0x440] sm:$0xff]  ;;  %v1007_v60 = vld [vmem:[#allocation3 + $0x428] sm:$0xff]  ;;  %v1009_v62 = vld [vmem:[#allocation3 + $0x438] sm:$0xff] }
 0x3f9   :  { %1151 = vmatpush1.bf16.msra.mxu0 %v916_v0  ;;  %1233 = vmatpush1.bf16.msra.mxu1 %v918_v1  ;;  %v1015_v63 = vld [vmem:[#allocation3 + $0x468] sm:$0xff]  ;;  %v1017_v0 = vld [vmem:[#allocation3 + $0x478] sm:$0xff]  ;;  %v1014_v1 = vld [vmem:[#allocation3 + $0x460] sm:$0xff] }
 0x3fa   :  { %1152 = vmatprep.subr.bf16.mxu0 %v924_v2  ;;  %1234 = vmatprep.subr.bf16.mxu1 %v926_v3  ;;  %v1016_v2 = vld [vmem:[#allocation3 + $0x470] sm:$0xff]  ;;  %v1022_v3 = vld [vmem:[#allocation3 + $0x4a0] sm:$0xff] }
 0x3fd   :  { %1153 = vmatpush1.bf16.msra.mxu0 %v923_v4  ;;  %1235 = vmatpush1.bf16.msra.mxu1 %v925_v5  ;;  %v1024_v4 = vld [vmem:[#allocation3 + $0x4b0] sm:$0xff]  ;;  %v1021_v5 = vld [vmem:[#allocation3 + $0x498] sm:$0xff] }
 0x3fe   :  { %1154 = vmatprep.subr.bf16.mxu0 %v931_v58  ;;  %1236 = vmatprep.subr.bf16.mxu1 %v933_v61  ;;  %v1023_v58 = vld [vmem:[#allocation3 + $0x4a8] sm:$0xff]  ;;  %v1029_v61 = vld [vmem:[#allocation3 + $0x4d8] sm:$0xff] }
 0x401   :  { %1155 = vmatpush1.bf16.msra.mxu0 %v930_v7  ;;  %1237 = vmatpush1.bf16.msra.mxu1 %v932_v8  ;;  %v1031_v7 = vld [vmem:[#allocation3 + $0x4e8] sm:$0xff]  ;;  %v1028_v8 = vld [vmem:[#allocation3 + $0x4d0] sm:$0xff] }
 0x402   :  { %1156 = vmatprep.subr.bf16.mxu0 %v938_v10  ;;  %1238 = vmatprep.subr.bf16.mxu1 %v940_v12  ;;  %v1030_v10 = vld [vmem:[#allocation3 + $0x4e0] sm:$0xff]  ;;  %v1036_v12 = vld [vmem:[#allocation3 + $0x510] sm:$0xff] }
 0x405   :  { %1157 = vmatpush1.bf16.msra.mxu0 %v937_v16  ;;  %1239 = vmatpush1.bf16.msra.mxu1 %v939_v18  ;;  %v1038_v16 = vld [vmem:[#allocation3 + $0x520] sm:$0xff]  ;;  %v1035_v18 = vld [vmem:[#allocation3 + $0x508] sm:$0xff] }
 0x406   :  { %1158 = vmatprep.subr.bf16.mxu0 %v945_v9  ;;  %1240 = vmatprep.subr.bf16.mxu1 %v947_v11  ;;  %v1037_v9 = vld [vmem:[#allocation3 + $0x518] sm:$0xff]  ;;  %v1043_v11 = vld [vmem:[#allocation3 + $0x548] sm:$0xff] }
 0x409   :  { %1159 = vmatpush1.bf16.msra.mxu0 %v944_v15  ;;  %1241 = vmatpush1.bf16.msra.mxu1 %v946_v13  ;;  %v1045_v15 = vld [vmem:[#allocation3 + $0x558] sm:$0xff]  ;;  %v1042_v13 = vld [vmem:[#allocation3 + $0x540] sm:$0xff] }
 0x40a   :  { %1160 = vmatprep.subr.bf16.mxu0 %v952_v19  ;;  %1242 = vmatprep.subr.bf16.mxu1 %v954_v14  ;;  %v1044_v19 = vld [vmem:[#allocation3 + $0x550] sm:$0xff]  ;;  %v1050_v14 = vld [vmem:[#allocation3 + $0x580] sm:$0xff] }
 0x40d   :  { %1161 = vmatpush1.bf16.msra.mxu0 %v951_v6  ;;  %1243 = vmatpush1.bf16.msra.mxu1 %v953_v17  ;;  %v1052_v6 = vld [vmem:[#allocation3 + $0x590] sm:$0xff]  ;;  %v1049_v17 = vld [vmem:[#allocation3 + $0x578] sm:$0xff] }
 0x40e   :  { %1162 = vmatprep.subr.bf16.mxu0 %v959_v20  ;;  %1244 = vmatprep.subr.bf16.mxu1 %v961_v21  ;;  %v1051_v20 = vld [vmem:[#allocation3 + $0x588] sm:$0xff]  ;;  %v1057_v21 = vld [vmem:[#allocation3 + $0x5b8] sm:$0xff] }
 0x411   :  { %1163 = vmatpush1.bf16.msra.mxu0 %v958_v22  ;;  %1245 = vmatpush1.bf16.msra.mxu1 %v960_v23  ;;  %v1059_v22 = vld [vmem:[#allocation3 + $0x5c8] sm:$0xff]  ;;  %v1056_v23 = vld [vmem:[#allocation3 + $0x5b0] sm:$0xff] }
 0x412   :  { %1164 = vmatprep.subr.bf16.mxu0 %v966_v42  ;;  %1246 = vmatprep.subr.bf16.mxu1 %v968_v24  ;;  %v1058_v42 = vld [vmem:[#allocation3 + $0x5c0] sm:$0xff]  ;;  %v1064_v24 = vld [vmem:[#allocation3 + $0x5f0] sm:$0xff] }
 0x415   :  { %1165 = vmatpush1.bf16.msra.mxu0 %v965_v26  ;;  %1247 = vmatpush1.bf16.msra.mxu1 %v967_v30  ;;  %v1066_v26 = vld [vmem:[#allocation3 + $0x600] sm:$0xff]  ;;  %v1063_v30 = vld [vmem:[#allocation3 + $0x5e8] sm:$0xff] }
 0x416   :  { %1166 = vmatprep.subr.bf16.mxu0 %v973_v31  ;;  %1248 = vmatprep.subr.bf16.mxu1 %v975_v32  ;;  %v1065_v31 = vld [vmem:[#allocation3 + $0x5f8] sm:$0xff]  ;;  %v1071_v32 = vld [vmem:[#allocation3 + $0x628] sm:$0xff] }
 0x419   :  { %1167 = vmatpush1.bf16.msra.mxu0 %v972_v33  ;;  %1249 = vmatpush1.bf16.msra.mxu1 %v974_v34  ;;  %v1073_v33 = vld [vmem:[#allocation3 + $0x638] sm:$0xff]  ;;  %v1070_v34 = vld [vmem:[#allocation3 + $0x620] sm:$0xff] }
 0x41a   :  { %1168 = vmatprep.subr.bf16.mxu0 %v980_v35  ;;  %1250 = vmatprep.subr.bf16.mxu1 %v982_v36  ;;  %v1072_v35 = vld [vmem:[#allocation3 + $0x630] sm:$0xff]  ;;  %v1078_v36 = vld [vmem:[#allocation3 + $0x660] sm:$0xff] }
 0x41d   :  { %1169 = vmatpush1.bf16.msra.mxu0 %v979_v37  ;;  %1251 = vmatpush1.bf16.msra.mxu1 %v981_v38  ;;  %v1080_v37 = vld [vmem:[#allocation3 + $0x670] sm:$0xff]  ;;  %v1077_v38 = vld [vmem:[#allocation3 + $0x658] sm:$0xff] }
 0x41e   :  { %1179 = vmatprep.subr.bf16.mxu0 %v987_v39  ;;  %1261 = vmatprep.subr.bf16.mxu1 %v989_v41  ;;  %v1079_v39 = vld [vmem:[#allocation3 + $0x668] sm:$0xff]  ;;  %v1085_v41 = vld [vmem:[#allocation3 + $0x698] sm:$0xff] }
 0x420   :  { %1171 = vmatmul.mubr.bf16.vlgmr.msra.gmra.mrb[4].mxu0 %v2000_v43  ;;  %1253 = vmatmul.mubr.bf16.vlgmr.msra.gmra.mrb[12].mxu1 %v2000_v43 }
 0x421   :  { %1180 = vmatpush1.bf16.msra.mxu0 %v986_v44  ;;  %1262 = vmatpush1.bf16.msra.mxu1 %v988_v45  ;;  %v1087_v44 = vld [vmem:[#allocation3 + $0x6a8] sm:$0xff]  ;;  %v1084_v45 = vld [vmem:[#allocation3 + $0x690] sm:$0xff] }
 0x422   :  { %1181 = vmatprep.subr.bf16.mxu0 %v994_v46  ;;  %1263 = vmatprep.subr.bf16.mxu1 %v996_v47  ;;  %v1086_v46 = vld [vmem:[#allocation3 + $0x6a0] sm:$0xff]  ;;  %v1092_v47 = vld [vmem:[#allocation3 + $0x6d0] sm:$0xff] }
 0x423   :  { %1211 = vmatprep.mubr.bf16.mxu0 %v2004_v50  ;;  %1293 = vmatprep.mubr.bf16.mxu1 %v2004_v50 }
 0x425   :  { %1182 = vmatpush1.bf16.msra.mxu0 %v993_v25  ;;  %1264 = vmatpush1.bf16.msra.mxu1 %v995_v51  ;;  %v1094_v25 = vld [vmem:[#allocation3 + $0x6e0] sm:$0xff]  ;;  %v1091_v51 = vld [vmem:[#allocation3 + $0x6c8] sm:$0xff] }
 0x426   :  { %1183 = vmatprep.subr.bf16.mxu0 %v1001_v52  ;;  %1265 = vmatprep.subr.bf16.mxu1 %v1003_v53  ;;  %v1093_v52 = vld [vmem:[#allocation3 + $0x6d8] sm:$0xff]  ;;  %v879_v53 = vld [vmem:[#allocation3 + $0x28] sm:$0xff] }
 0x429   :  { %1184 = vmatpush1.bf16.msra.mxu0 %v1000_v28  ;;  %1266 = vmatpush1.bf16.msra.mxu1 %v1002_v54  ;;  %v936_v28 = vld [vmem:[#allocation3 + $0x1f0] sm:$0xff]  ;;  %v2012_v54 = vpack.c.bf16 %v1990_v27, %v1990_v27  ;;  %v893_v27 = vld [vmem:[#allocation3 + $0x98] sm:$0xff] }
 0x42a   :  { %1185 = vmatprep.subr.bf16.mxu0 %v1008_v57  ;;  %1267 = vmatprep.subr.bf16.mxu1 %v1010_v59  ;;  %v878_v57 = vld [vmem:[#allocation3 + $0x20] sm:$0xff]  ;;  %v880_v59 = vld [vmem:[#allocation3 + $0x30] sm:$0xff] }
 0x42d   :  { %1186 = vmatpush1.bf16.msra.mxu0 %v1007_v60  ;;  %1268 = vmatpush1.bf16.msra.mxu1 %v1009_v62  ;;  %v886_v60 = vld [vmem:[#allocation3 + $0x60] sm:$0xff]  ;;  %v943_v62 = vld [vmem:[#allocation3 + $0x228] sm:$0xff] }
 0x42e   :  { %1187 = vmatprep.subr.bf16.mxu0 %v1015_v63  ;;  %1269 = vmatprep.subr.bf16.mxu1 %v1017_v0  ;;  %v885_v63 = vld [vmem:[#allocation3 + $0x58] sm:$0xff]  ;;  %v887_v0 = vld [vmem:[#allocation3 + $0x68] sm:$0xff] }
 0x431   :  { %1188 = vmatpush1.bf16.msra.mxu0 %v1014_v1  ;;  %1270 = vmatpush1.bf16.msra.mxu1 %v1016_v2  ;;  %v950_v1 = vld [vmem:[#allocation3 + $0x260] sm:$0xff]  ;;  %v892_v2 = vld [vmem:[#allocation3 + $0x90] sm:$0xff] }
 0x432   :  { %1189 = vmatprep.subr.bf16.mxu0 %v1022_v3  ;;  %1271 = vmatprep.subr.bf16.mxu1 %v1024_v4  ;;  %v894_v3 = vld [vmem:[#allocation3 + $0xa0] sm:$0xff]  ;;  %v900_v4 = vld [vmem:[#allocation3 + $0xd0] sm:$0xff] }
 0x435   :  { %1190 = vmatpush1.bf16.msra.mxu0 %v1021_v5  ;;  %1272 = vmatpush1.bf16.msra.mxu1 %v1023_v58  ;;  %v957_v5 = vld [vmem:[#allocation3 + $0x298] sm:$0xff]  ;;  %v899_v58 = vld [vmem:[#allocation3 + $0xc8] sm:$0xff] }
 0x436   :  { %1191 = vmatprep.subr.bf16.mxu0 %v1029_v61  ;;  %1273 = vmatprep.subr.bf16.mxu1 %v1031_v7  ;;  %v901_v61 = vld [vmem:[#allocation3 + $0xd8] sm:$0xff]  ;;  %v907_v7 = vld [vmem:[#allocation3 + $0x108] sm:$0xff] }
 0x439   :  { %1192 = vmatpush1.bf16.msra.mxu0 %v1028_v8  ;;  %1274 = vmatpush1.bf16.msra.mxu1 %v1030_v10  ;;  %v964_v8 = vld [vmem:[#allocation3 + $0x2d0] sm:$0xff] }
 0x43a   :  { %1193 = vmatprep.subr.bf16.mxu0 %v1036_v12  ;;  %1275 = vmatprep.subr.bf16.mxu1 %v1038_v16  ;;  %v908_v10 = vld [vmem:[#allocation3 + $0x110] sm:$0xff]  ;;  %v914_v12 = vld [vmem:[#allocation3 + $0x140] sm:$0xff]  ;;  %v971_v16 = vld [vmem:[#allocation3 + $0x308] sm:$0xff] }
 0x43d   :  { %1194 = vmatpush1.bf16.msra.mxu0 %v1035_v18  ;;  %1276 = vmatpush1.bf16.msra.mxu1 %v1037_v9  ;;  %v913_v18 = vld [vmem:[#allocation3 + $0x138] sm:$0xff]  ;;  %v915_v9 = vld [vmem:[#allocation3 + $0x148] sm:$0xff] }
 0x43e   :  { %1195 = vmatprep.subr.bf16.mxu0 %v1043_v11  ;;  %1277 = vmatprep.subr.bf16.mxu1 %v1045_v15  ;;  %v921_v11 = vld [vmem:[#allocation3 + $0x178] sm:$0xff]  ;;  %v978_v15 = vld [vmem:[#allocation3 + $0x340] sm:$0xff] }
 0x441   :  { %1196 = vmatpush1.bf16.msra.mxu0 %v1042_v13  ;;  %1278 = vmatpush1.bf16.msra.mxu1 %v1044_v19  ;;  %v920_v13 = vld [vmem:[#allocation3 + $0x170] sm:$0xff]  ;;  %v922_v19 = vld [vmem:[#allocation3 + $0x180] sm:$0xff] }
 0x442   :  { %1197 = vmatprep.subr.bf16.mxu0 %v1050_v14  ;;  %1279 = vmatprep.subr.bf16.mxu1 %v1052_v6  ;;  %v928_v14 = vld [vmem:[#allocation3 + $0x1b0] sm:$0xff]  ;;  %v985_v6 = vld [vmem:[#allocation3 + $0x378] sm:$0xff] }
 0x445   :  { %1198 = vmatpush1.bf16.msra.mxu0 %v1049_v17  ;;  %1280 = vmatpush1.bf16.msra.mxu1 %v1051_v20  ;;  %v927_v17 = vld [vmem:[#allocation3 + $0x1a8] sm:$0xff]  ;;  %v929_v20 = vld [vmem:[#allocation3 + $0x1b8] sm:$0xff] }
 0x446   :  { %1199 = vmatprep.subr.bf16.mxu0 %v1057_v21  ;;  %1281 = vmatprep.subr.bf16.mxu1 %v1059_v22  ;;  %v935_v21 = vld [vmem:[#allocation3 + $0x1e8] sm:$0xff]  ;;  %v1048_v22 = vld [vmem:[#allocation3 + $0x570] sm:$0xff] }
 0x449   :  { %1200 = vmatpush1.bf16.msra.mxu0 %v1056_v23  ;;  %1282 = vmatpush1.bf16.msra.mxu1 %v1058_v42  ;;  %v934_v23 = vld [vmem:[#allocation3 + $0x1e0] sm:$0xff]  ;;  %v992_v42 = vld [vmem:[#allocation3 + $0x3b0] sm:$0xff] }
 0x44a   :  { %1201 = vmatprep.subr.bf16.mxu0 %v1064_v24  ;;  %1283 = vmatprep.subr.bf16.mxu1 %v1066_v26  ;;  %v942_v24 = vld [vmem:[#allocation3 + $0x220] sm:$0xff]  ;;  %v1055_v26 = vld [vmem:[#allocation3 + $0x5a8] sm:$0xff] }
 0x44d   :  { %1202 = vmatpush1.bf16.msra.mxu0 %v1063_v30  ;;  %1284 = vmatpush1.bf16.msra.mxu1 %v1065_v31  ;;  %v941_v30 = vld [vmem:[#allocation3 + $0x218] sm:$0xff]  ;;  %v999_v31 = vld [vmem:[#allocation3 + $0x3e8] sm:$0xff] }
 0x44e   :  { %1203 = vmatprep.subr.bf16.mxu0 %v1071_v32  ;;  %1285 = vmatprep.subr.bf16.mxu1 %v1073_v33  ;;  %v949_v32 = vld [vmem:[#allocation3 + $0x258] sm:$0xff]  ;;  %v1062_v33 = vld [vmem:[#allocation3 + $0x5e0] sm:$0xff] }
 0x451   :  { %1204 = vmatpush1.bf16.msra.mxu0 %v1070_v34  ;;  %1286 = vmatpush1.bf16.msra.mxu1 %v1072_v35  ;;  %v948_v34 = vld [vmem:[#allocation3 + $0x250] sm:$0xff]  ;;  %v1006_v35 = vld [vmem:[#allocation3 + $0x420] sm:$0xff] }
 0x452   :  { %1205 = vmatprep.subr.bf16.mxu0 %v1078_v36  ;;  %1287 = vmatprep.subr.bf16.mxu1 %v1080_v37  ;;  %v956_v36 = vld [vmem:[#allocation3 + $0x290] sm:$0xff]  ;;  %v1069_v37 = vld [vmem:[#allocation3 + $0x618] sm:$0xff] }
 0x455   :  { %1206 = vmatpush1.bf16.msra.mxu0 %v1077_v38  ;;  %1288 = vmatpush1.bf16.msra.mxu1 %v1079_v39  ;;  %v955_v38 = vld [vmem:[#allocation3 + $0x288] sm:$0xff]  ;;  %v1013_v39 = vld [vmem:[#allocation3 + $0x458] sm:$0xff] }
 0x456   :  { %1207 = vmatprep.subr.bf16.mxu0 %v1085_v41  ;;  %1289 = vmatprep.subr.bf16.mxu1 %v1087_v44  ;;  %v963_v41 = vld [vmem:[#allocation3 + $0x2c8] sm:$0xff]  ;;  %v1076_v44 = vld [vmem:[#allocation3 + $0x650] sm:$0xff] }
 0x459   :  { %1208 = vmatpush1.bf16.msra.mxu0 %v1084_v45  ;;  %1290 = vmatpush1.bf16.msra.mxu1 %v1086_v46  ;;  %v962_v45 = vld [vmem:[#allocation3 + $0x2c0] sm:$0xff]  ;;  %v1020_v46 = vld [vmem:[#allocation3 + $0x490] sm:$0xff] }
 0x45a   :  { %1209 = vmatprep.subr.bf16.mxu0 %v1092_v47  ;;  %1291 = vmatprep.subr.bf16.mxu1 %v1094_v25  ;;  %v970_v47 = vld [vmem:[#allocation3 + $0x300] sm:$0xff]  ;;  %v1083_v25 = vld [vmem:[#allocation3 + $0x688] sm:$0xff] }
 0x45d   :  { %1210 = vmatpush1.bf16.msra.mxu0 %v1091_v51  ;;  %1292 = vmatpush1.bf16.msra.mxu1 %v1093_v52  ;;  %v969_v51 = vld [vmem:[#allocation3 + $0x2f8] sm:$0xff]  ;;  %v1027_v52 = vld [vmem:[#allocation3 + $0x4c8] sm:$0xff] }
 0x45e   :  { %1302 = vmatprep.subr.bf16.mxu0 %v879_v53  ;;  %1531 = vmatprep.subr.bf16.mxu1 %v936_v28  ;;  %v977_v53 = vld [vmem:[#allocation3 + $0x338] sm:$0xff]  ;;  %v1090_v28 = vld [vmem:[#allocation3 + $0x6c0] sm:$0xff] }
 0x460   :  { %1212 = vmatmul.mubr.bf16.vlgmr.msra.gmra.mrb[4].mxu0 %v2012_v54  ;;  %1294 = vmatmul.mubr.bf16.vlgmr.msra.gmra.mrb[12].mxu1 %v2012_v54 }
 0x461   :  { %1303 = vmatpush1.bf16.msra.mxu0 %v878_v57  ;;  %1532 = vmatpush3.bf16.msra.mxu1 %v880_v59  ;;  %v976_v57 = vld [vmem:[#allocation3 + $0x330] sm:$0xff]  ;;  %v1034_v59 = vld [vmem:[#allocation3 + $0x500] sm:$0xff] }
 0x462   :  { %1304 = vmatprep.subr.bf16.mxu0 %v886_v60  ;;  %1533 = vmatprep.subr.bf16.mxu1 %v943_v62  ;;  %v984_v60 = vld [vmem:[#allocation3 + $0x370] sm:$0xff]  ;;  %v1097_v62 = vld [vmem:[#allocation3 + $0x6f8] sm:$0xff] }
 0x463   :  { %1334 = vmatprep.mubr.bf16.mxu0 %v1994_v29  ;;  %1416 = vmatprep.mubr.bf16.mxu1 %v1994_v29  ;;  %v906_v29 = vld [vmem:[#allocation3 + $0x100] sm:$0xff] }
 0x465   :  { %1305 = vmatpush1.bf16.msra.mxu0 %v885_v63  ;;  %1534 = vmatpush3.bf16.msra.mxu1 %v887_v0  ;;  %v983_v63 = vld [vmem:[#allocation3 + $0x368] sm:$0xff]  ;;  %v1041_v0 = vld [vmem:[#allocation3 + $0x538] sm:$0xff] }
 0x466   :  { %1306 = vmatprep.subr.bf16.mxu0 %v893_v27  ;;  %1535 = vmatprep.subr.bf16.mxu1 %v950_v1  ;;  %v991_v27 = vld [vmem:[#allocation3 + $0x3a8] sm:$0xff]  ;;  %v990_v1 = vld [vmem:[#allocation3 + $0x3a0] sm:$0xff] }
 0x469   :  { %1307 = vmatpush1.bf16.msra.mxu0 %v892_v2  ;;  %1536 = vmatpush3.bf16.msra.mxu1 %v894_v3  ;;  %v998_v2 = vld [vmem:[#allocation3 + $0x3e0] sm:$0xff]  ;;  %v997_v3 = vld [vmem:[#allocation3 + $0x3d8] sm:$0xff] }
 0x46a   :  { %1308 = vmatprep.subr.bf16.mxu0 %v900_v4  ;;  %1537 = vmatprep.subr.bf16.mxu1 %v957_v5  ;;  %v1005_v4 = vld [vmem:[#allocation3 + $0x418] sm:$0xff]  ;;  %v1004_v5 = vld [vmem:[#allocation3 + $0x410] sm:$0xff] }
 0x46d   :  { %1309 = vmatpush1.bf16.msra.mxu0 %v899_v58  ;;  %1538 = vmatpush3.bf16.msra.mxu1 %v901_v61  ;;  %v1012_v58 = vld [vmem:[#allocation3 + $0x450] sm:$0xff]  ;;  %v1011_v61 = vld [vmem:[#allocation3 + $0x448] sm:$0xff] }
 0x46e   :  { %1310 = vmatprep.subr.bf16.mxu0 %v907_v7  ;;  %1539 = vmatprep.subr.bf16.mxu1 %v964_v8  ;;  %v1019_v7 = vld [vmem:[#allocation3 + $0x488] sm:$0xff]  ;;  %v1018_v8 = vld [vmem:[#allocation3 + $0x480] sm:$0xff] }
 0x471   :  { %1311 = vmatpush1.bf16.msra.mxu0 %v906_v29  ;;  %1540 = vmatpush3.bf16.msra.mxu1 %v908_v10  ;;  %v1025_v29 = vld [vmem:[#allocation3 + $0x4b8] sm:$0xff] }
 0x472   :  { %1312 = vmatprep.subr.bf16.mxu0 %v914_v12  ;;  %1541 = vmatprep.subr.bf16.mxu1 %v971_v16  ;;  %v1033_v10 = vld [vmem:[#allocation3 + $0x4f8] sm:$0xff]  ;;  %v1040_v12 = vld [vmem:[#allocation3 + $0x530] sm:$0xff]  ;;  %v1039_v16 = vld [vmem:[#allocation3 + $0x528] sm:$0xff] }
 0x475   :  { %1313 = vmatpush1.bf16.msra.mxu0 %v913_v18  ;;  %1542 = vmatpush3.bf16.msra.mxu1 %v915_v9  ;;  %v1047_v18 = vld [vmem:[#allocation3 + $0x568] sm:$0xff]  ;;  %v1046_v9 = vld [vmem:[#allocation3 + $0x560] sm:$0xff] }
 0x476   :  { %1314 = vmatprep.subr.bf16.mxu0 %v921_v11  ;;  %1543 = vmatprep.subr.bf16.mxu1 %v978_v15  ;;  %v1054_v11 = vld [vmem:[#allocation3 + $0x5a0] sm:$0xff]  ;;  %v1053_v15 = vld [vmem:[#allocation3 + $0x598] sm:$0xff] }
 0x479   :  { %1315 = vmatpush1.bf16.msra.mxu0 %v920_v13  ;;  %1544 = vmatpush3.bf16.msra.mxu1 %v922_v19  ;;  %v1061_v13 = vld [vmem:[#allocation3 + $0x5d8] sm:$0xff]  ;;  %v1060_v19 = vld [vmem:[#allocation3 + $0x5d0] sm:$0xff] }
 0x47a   :  { %1316 = vmatprep.subr.bf16.mxu0 %v928_v14  ;;  %1545 = vmatprep.subr.bf16.mxu1 %v985_v6  ;;  %v1068_v14 = vld [vmem:[#allocation3 + $0x610] sm:$0xff]  ;;  %v1067_v6 = vld [vmem:[#allocation3 + $0x608] sm:$0xff] }
 0x47d   :  { %1317 = vmatpush1.bf16.msra.mxu0 %v927_v17  ;;  %1546 = vmatpush3.bf16.msra.mxu1 %v929_v20  ;;  %v1075_v17 = vld [vmem:[#allocation3 + $0x648] sm:$0xff]  ;;  %v1074_v20 = vld [vmem:[#allocation3 + $0x640] sm:$0xff] }
 0x47e   :  { %1318 = vmatprep.subr.bf16.mxu0 %v935_v21  ;;  %1553 = vmatprep.subr.bf16.mxu1 %v1048_v22  ;;  %v1082_v21 = vld [vmem:[#allocation3 + $0x680] sm:$0xff]  ;;  %v1081_v22 = vld [vmem:[#allocation3 + $0x678] sm:$0xff] }
 0x480   :  { %1417 = vmatmul.mubr.bf16.vlgmr.msra.gmra.mrb[16].mxu1 %v2000_v43 }
 0x481   :  { %1319 = vmatpush1.bf16.msra.mxu0 %v934_v23  ;;  %1554 = vmatpush3.bf16.msra.mxu1 %v992_v42  ;;  %v1089_v23 = vld [vmem:[#allocation3 + $0x6b8] sm:$0xff]  ;;  %v1088_v42 = vld [vmem:[#allocation3 + $0x6b0] sm:$0xff] }
 0x482   :  { %1320 = vmatprep.subr.bf16.mxu0 %v942_v24  ;;  %1555 = vmatprep.subr.bf16.mxu1 %v1055_v26  ;;  %v1096_v24 = vld [vmem:[#allocation3 + $0x6f0] sm:$0xff]  ;;  %v1095_v26 = vld [vmem:[#allocation3 + $0x6e8] sm:$0xff] }
 0x483   :  { %1456 = vmatprep.mubr.bf16.mxu1 %v2004_v50 }
 0x485   :  { %1321 = vmatpush1.bf16.msra.mxu0 %v941_v30  ;;  %1556 = vmatpush3.bf16.msra.mxu1 %v999_v31  ;;  %v1099_v30 = vld [vmem:[#allocation10 + $0x6] ss:$8 sm:$0xf] }
 0x486   :  { %1322 = vmatprep.subr.bf16.mxu0 %v949_v32  ;;  %1557 = vmatprep.subr.bf16.mxu1 %v1062_v33  ;;  %v1100_v31 = vld [vmem:[#allocation10 + $0x6] ss:$8 sm:$0xf0] }
 0x487   :  { %v1101_v32 = vor.u32 %v1100_v31, %v1099_v30 }
 0x489   :  { %1323 = vmatpush1.bf16.msra.mxu0 %v948_v34  ;;  %1558 = vmatpush3.bf16.msra.mxu1 %v1006_v35  ;;  %v1106_v33 = vrot.slane %v1101_v32, %v1924_v48  ;;  %v1114_v34 = vrot.slane %v1101_v32, %v1968_v55  ;;  %v1110_v35 = vrot.slane %v1101_v32, %v1927_v49 }
 0x48a   :  { %1324 = vmatprep.subr.bf16.mxu0 %v956_v36  ;;  %1559 = vmatprep.subr.bf16.mxu1 %v1069_v37  ;;  %v1118_v36 = vrot.slane %v1101_v32, %v1971_v56 }
 0x48d   :  { %1325 = vmatpush1.bf16.msra.mxu0 %v955_v38  ;;  %1560 = vmatpush3.bf16.msra.mxu1 %v1013_v39 }
 0x48e   :  { %1326 = vmatprep.subr.bf16.mxu0 %v963_v41  ;;  %1561 = vmatprep.subr.bf16.mxu1 %v1076_v44 }
 0x491   :  { %1327 = vmatpush1.bf16.msra.mxu0 %v962_v45  ;;  %1562 = vmatpush3.bf16.msra.mxu1 %v1020_v46 }
 0x492   :  { %1328 = vmatprep.subr.bf16.mxu0 %v970_v47  ;;  %1563 = vmatprep.subr.bf16.mxu1 %v1083_v25 }
 0x495   :  { %1329 = vmatpush1.bf16.msra.mxu0 %v969_v51  ;;  %1564 = vmatpush3.bf16.msra.mxu1 %v1027_v52 }
 0x496   :  { %1330 = vmatprep.subr.bf16.mxu0 %v977_v53  ;;  %1565 = vmatprep.subr.bf16.mxu1 %v1090_v28 }
 0x499   :  { %1331 = vmatpush1.bf16.msra.mxu0 %v976_v57  ;;  %1566 = vmatpush3.bf16.msra.mxu1 %v1034_v59 }
 0x49a   :  { %1332 = vmatprep.subr.bf16.mxu0 %v984_v60  ;;  %1567 = vmatprep.subr.bf16.mxu1 %v1097_v62  ;;  %v1129_v62 = vsub.s32 6, %v1916_v40 }
 0x49d   :  { %1333 = vmatpush1.bf16.msra.mxu0 %v983_v63  ;;  %1568 = vmatpush3.bf16.msra.mxu1 %v1041_v0  ;;  %v1130_v63 = vrot.slane %v1101_v32, %v1129_v62 }
 0x49e   :  { %1343 = vmatprep.subr.bf16.mxu0 %v991_v27 }
 0x4a0   :  { %1335 = vmatmul.mubr.bf16.vlgmr.msra.gmra.mrb[8].mxu0 %v2000_v43  ;;  %1457 = vmatmul.mubr.bf16.vlgmr.msra.gmra.mrb[20].mxu1 %v2012_v54  ;;  %v1026_v43 = vld [vmem:[#allocation3 + $0x4c0] sm:$0xff] }
 0x4a1   :  { %1344 = vmatpush1.bf16.msra.mxu0 %v990_v1  ;;  %1375 = vmatprep.mubr.bf16.mxu0 %v2004_v50  ;;  %v1032_v50 = vld [vmem:[#allocation3 + $0x4f0] sm:$0xff] }
 0x4a2   :  { %1345 = vmatprep.subr.bf16.mxu0 %v998_v2 }
 0x4a5   :  { %1346 = vmatpush1.bf16.msra.mxu0 %v997_v3 }
 0x4a6   :  { %1347 = vmatprep.subr.bf16.mxu0 %v1005_v4 }
 0x4a9   :  { %1348 = vmatpush1.bf16.msra.mxu0 %v1004_v5 }
 0x4aa   :  { %1349 = vmatprep.subr.bf16.mxu0 %v1012_v58 }
 0x4ad   :  { %1350 = vmatpush1.bf16.msra.mxu0 %v1011_v61  ;;  %v1121_v61 = vsub.s32 4, %v1916_v40 }
 0x4ae   :  { %1351 = vmatprep.subr.bf16.mxu0 %v1019_v7  ;;  %v1125_v7 = vsub.s32 5, %v1916_v40 }
 0x4b1   :  { %1352 = vmatpush1.bf16.msra.mxu0 %v1018_v8  ;;  %v1122_v8 = vrot.slane %v1101_v32, %v1121_v61 }
 0x4b2   :  { %1353 = vmatprep.subr.bf16.mxu0 %v1026_v43  ;;  %v1126_v43 = vrot.slane %v1101_v32, %v1125_v7 }
 0x4b5   :  { %1354 = vmatpush1.bf16.msra.mxu0 %v1025_v29 }
 0x4b6   :  { %1355 = vmatprep.subr.bf16.mxu0 %v1033_v10 }
 0x4b9   :  { %1356 = vmatpush1.bf16.msra.mxu0 %v1032_v50 }
 0x4ba   :  { %1357 = vmatprep.subr.bf16.mxu0 %v1040_v12 }
 0x4bd   :  { %1358 = vmatpush1.bf16.msra.mxu0 %v1039_v16 }
 0x4be   :  { %1359 = vmatprep.subr.bf16.mxu0 %v1047_v18 }
 0x4c1   :  { %1360 = vmatpush1.bf16.msra.mxu0 %v1046_v9 }
 0x4c2   :  { %1361 = vmatprep.subr.bf16.mxu0 %v1054_v11 }
 0x4c5   :  { %1362 = vmatpush1.bf16.msra.mxu0 %v1053_v15 }
 0x4c6   :  { %1363 = vmatprep.subr.bf16.mxu0 %v1061_v13 }
 0x4c9   :  { %1364 = vmatpush1.bf16.msra.mxu0 %v1060_v19 }
 0x4ca   :  { %1365 = vmatprep.subr.bf16.mxu0 %v1068_v14 }
 0x4cd   :  { %1366 = vmatpush1.bf16.msra.mxu0 %v1067_v6 }
 0x4ce   :  { %1367 = vmatprep.subr.bf16.mxu0 %v1075_v17 }
 0x4d1   :  { %1368 = vmatpush1.bf16.msra.mxu0 %v1074_v20 }
 0x4d2   :  { %1369 = vmatprep.subr.bf16.mxu0 %v1082_v21 }
 0x4d5   :  { %1370 = vmatpush1.bf16.msra.mxu0 %v1081_v22 }
 0x4d6   :  { %1371 = vmatprep.subr.bf16.mxu0 %v1089_v23 }
 0x4d9   :  { %1372 = vmatpush1.bf16.msra.mxu0 %v1088_v42 }
 0x4da   :  { %1373 = vmatprep.subr.bf16.mxu0 %v1096_v24 }
 0x4dd   :  { %1374 = vmatpush1.bf16.msra.mxu0 %v1095_v26 }
 0x4e0   :  { %1376 = vmatmul.mubr.bf16.vlgmr.msra.gmra.mrb[8].mxu0 %v2012_v54 }
 0x533   :  { %v1213_v37 = vpop.f32.mrb[4].mxu0  ;;  %v1295_v38 = vpop.f32.mrb[12].mxu1 }
 0x534   :  { %v1587_v39 = vadd.f32 %v1213_v37, %v1106_v33  ;;  %v1589_v41 = vadd.f32 %v1295_v38, %v1114_v34  ;;  %v1215_v44 = vpop.f32.mrb[5].mxu0  ;;  %v1297_v45 = vpop.f32.mrb[13].mxu1 }
 0x535   :  { %v1588_v46 = vadd.f32 %v1215_v44, %v1110_v35  ;;  %v1590_v47 = vadd.f32 %v1297_v45, %v1118_v36  ;;  %v1217_v54 = vpop.f32.mrb[6].mxu0  ;;  %v1299_v25 = vpop.f32.mrb[14].mxu1 }
 0x536   :  { %1671 = vtanh.f32 %v1587_v39  ;;  %v1218_v51 = vpop.f32.mrb[7].mxu0  ;;  %v1300_v52 = vpop.f32.mrb[15].mxu1 }
 0x537   :  { %1673 = vtanh.f32 %v1589_v41 }
 0x538   :  { %1675 = vtanh.f32 %v1588_v46 }
 0x539   :  { %1677 = vtanh.f32 %v1590_v47 }
 0x540   :  { %v1672_v48 = vpop.eup %1671 }
 0x541   :  { %v1674_v49 = vpop.eup %1673  ;;  %1471 = vst [vmem:[%s2058_s6] sm:$0xff] %v1672_v48 }
 0x542   :  { %v1676_v55 = vpop.eup %1675  ;;  %1473 = vst [vmem:[%s2058_s6 + $0x10] sm:$0xff] %v1674_v49 }
 0x543   :  { %v1678_v56 = vpop.eup %1677  ;;  %1472 = vst [vmem:[%s2058_s6 + $0x8] sm:$0xff] %v1676_v55 }
 0x544   :  { %1474 = vst [vmem:[%s2058_s6 + $0x18] sm:$0xff] %v1678_v56 }
 0x553   :  { %v1547_v53 = vpop.f32.mrb[16].mxu1 }
 0x554   :  { %v1548_v28 = vpop.f32.mrb[17].mxu1 }
 0x555   :  { %v1549_v57 = vadd.f32 %v1548_v28, %v1547_v53  ;;  %v1550_v59 = vpop.f32.mrb[18].mxu1 }
 0x556   :  { %v1551_v60 = vpop.f32.mrb[19].mxu1 }
 0x557   :  { %v1419_v0 = vadd.f32 %v1549_v57, %v1130_v63 }
 0x573   :  { %v1569_v27 = vpop.f32.mrb[20].mxu1 }
 0x574   :  { %v1570_v1 = vpop.f32.mrb[21].mxu1 }
 0x575   :  { %v1571_v2 = vadd.f32 %v1570_v1, %v1569_v27  ;;  %v1572_v3 = vpop.f32.mrb[22].mxu1 }
 0x576   :  { %v1573_v4 = vpop.f32.mrb[23].mxu1 }
 0x577   :  { %v1459_v5 = vadd.f32 %v1571_v2, %v1419_v0 }
 0x579   :  { %1679 = vtanh.f32 %v1459_v5 }
 0x583   :  { %v1680_v58 = vpop.eup %1679 }
 0x584   :  { %1478 = vst.msk [vmem:[%s2058_s6 + $0x30] sm:$0xff] %vm1477_vm9, %v1680_v58 }
 0x5b3   :  { %v1377_v29 = vpop.f32.mrb[8].mxu0 }
 0x5b4   :  { %v1591_v10 = vadd.f32 %v1377_v29, %v1122_v8  ;;  %v1379_v50 = vpop.f32.mrb[9].mxu0 }
 0x5b5   :  { %v1592_v12 = vadd.f32 %v1379_v50, %v1126_v43  ;;  %v1381_v16 = vpop.f32.mrb[10].mxu0 }
 0x5b6   :  { %1681 = vtanh.f32 %v1591_v10  ;;  %v1382_v18 = vpop.f32.mrb[11].mxu0 }
 0x5b7   :  { %1683 = vtanh.f32 %v1592_v12 }
 0x5c0   :  { %v1682_v9 = vpop.eup %1681 }
 0x5c1   :  { %v1684_v11 = vpop.eup %1683  ;;  %1475 = vst [vmem:[%s2058_s6 + $0x20] sm:$0xff] %v1682_v9 }
 0x5c2   :  { %1476 = vst [vmem:[%s2058_s6 + $0x28] sm:$0xff] %v1684_v11 }
 0x5c3   :  { %1483 = vsyncpa [#allocation6], 1 }
 0x5c4   :  { %1484 = vsyncpa [#allocation8], 1 }
 0x5c5   :  { %1485 = vsyncpa [#allocation11], 1 }
 0x5c6   :  { %1486 = vsyncmov [#allocation4] }
 0x5c9   :  { %s1487_s27 = vpop.sfrf %1486 }
 0x5ca   :  { %p1524_p4 = scmp.ne.s32.totalorder %s1487_s27, 0 }
 0x5cc   :  { %1491 = shalt.err (%p1524_p4)  }
 0x5cd   :  { %1493 = vsyncmov [#allocation4 + $0x1] }
 0x5d0   :  { %s1494_s28 = vpop.sfrf %1493 }
 0x5d1   :  { %p1525_p5 = scmp.ne.s32.totalorder %s1494_s28, 0 }
 0x5d3   :  { %1498 = shalt.err (%p1525_p5)  }

</bundles_post_ra>
